<compile_context>
chip_gen: v5e
topology: v5e:2x2
jax: 0.10.0
libtpu: 0.0.40
codegen_flags: <defaults>
</compile_context>

<pallas_src>
import functools

import jax
import jax.numpy as jnp
from jax import lax
from jax.experimental import pallas as pl
from jax.experimental.pallas import tpu as pltpu


def _chamfer_kernel(x_ref, y_ref, out_ref, d1_min, d2_min, s1_acc, s2_acc,
                    *, n_valid, m_valid, mask_n, mask_m, use_mxu):
    # x_ref: (1, tn, 8)  augmented cloud-1 points  [x, 1, ||x||^2, 0, 0, 0]
    # y_ref: (1, 8, tm)  augmented cloud-2 points  [-2y ; ||y||^2 ; 0...] lane-dense
    n = pl.program_id(1)
    m = pl.program_id(2)
    n_last = pl.num_programs(1) - 1
    m_last = pl.num_programs(2) - 1

    xa = x_ref[0]                                   # (tn, 8)
    ya = y_ref[0]                                   # (8, tm)
    tn = xa.shape[0]
    tm = ya.shape[1]

    # ---- per-batch accumulator reset (first step of this batch) ------------
    @pl.when((n == 0) & (m == 0))
    def _():
        s1_acc[...] = jnp.zeros_like(s1_acc)
        s2_acc[...] = jnp.zeros_like(s2_acc)

    # ---- pairwise squared distances for this (tn, tm) tile -----------------
    if use_mxu:
        # ||x||^2 + ||y||^2 - 2 x.y : cross term + ||y||^2 via one MXU matmul
        # (K = 8), then a single VPU broadcast-add of ||x||^2 (column 4).
        d = jnp.dot(xa, ya, preferred_element_type=jnp.float32) + xa[:, 4:5]
    else:
        # Exact sum of squared differences (pure VPU); y = -0.5 * (-2y) row.
        d = None
        for k in range(3):
            diff = xa[:, k:k + 1] + 0.5 * ya[k:k + 1, :]    # x - y, (tn, tm)
            sq = diff * diff
            d = sq if d is None else d + sq

    # ---- dist1: lane-dense running partial min over the M axis -------------
    part1 = d[:, 0:128]
    for c in range(1, tm // 128):
        part1 = jnp.minimum(part1, d[:, c * 128:(c + 1) * 128])

    @pl.when(m == 0)
    def _():
        d1_min[...] = jnp.full(d1_min.shape, jnp.inf, jnp.float32)
    d1_min[...] = jnp.minimum(d1_min[...], part1)

    # ---- dist2: sublane-dense running partial min over the N axis ----------
    part2 = d[0:8, :]
    for g in range(1, tn // 8):
        part2 = jnp.minimum(part2, d[g * 8:(g + 1) * 8, :])

    @pl.when(n == 0)
    def _():
        d2_min[m] = jnp.full((8, tm), jnp.inf, jnp.float32)
    d2_min[m] = jnp.minimum(d2_min[m], part2)

    # ---- finalize dist1 for this n-tile (once per n, after the last m) -----
    @pl.when(m == m_last)
    def _():
        full1 = jnp.min(d1_min[...], axis=1, keepdims=True)        # (tn, 1)
        sq1 = jnp.sqrt(jnp.maximum(full1, 0.0))
        if mask_n:
            row = n * tn + lax.broadcasted_iota(jnp.int32, (tn, 1), 0)
            sq1 = jnp.where(row < n_valid, sq1, 0.0)
        s1_acc[...] += jnp.sum(sq1)

    # ---- dist2 finalize spread over the n_last row (once per m) ------------
    @pl.when(n == n_last)
    def _():
        full2 = jnp.min(d2_min[m], axis=0, keepdims=True)          # (1, tm)
        sq2 = jnp.sqrt(jnp.maximum(full2, 0.0))
        if mask_m:
            lane = m * tm + lax.broadcasted_iota(jnp.int32, (1, tm), 1)
            sq2 = jnp.where(lane < m_valid, sq2, 0.0)
        fold = sq2[:, 0:128]
        for c in range(1, tm // 128):
            fold = fold + sq2[:, c * 128:(c + 1) * 128]
        s2_acc[...] += fold                                        # (1, 128)

    # ---- per-batch epilogue: pack both sums into one (8,128) output slab ---
    @pl.when((n == n_last) & (m == m_last))
    def _():
        s1 = jnp.sum(s1_acc[...])                  # sum_i sqrt(dist1)
        s2 = jnp.sum(s2_acc[...])                  # sum_j sqrt(dist2)
        sub = lax.broadcasted_iota(jnp.int32, (8, 128), 0)
        lane = lax.broadcasted_iota(jnp.int32, (8, 128), 1)
        slab = jnp.where((sub == 0) & (lane == 0), s1,
                         jnp.where((sub == 0) & (lane == 1), s2, 0.0))
        out_ref[0] = slab


def _round_up(x, q):
    return (x + q - 1) // q * q


def _vmem_limit_bytes(tn, tm, m_tiles):
    """Budget VMEM from actual block/scratch/temp sizes, capped per chip gen."""
    blocks = 2 * (tn * 8 + 8 * tm + 8 * 128) * 4          # double-buffered I/O
    scratch = (tn * 128 + m_tiles * 8 * tm + 2 * 8 * 128) * 4
    temps = 3 * tn * tm * 4                                # d tile + fold temps
    want = blocks + scratch + temps + (8 << 20)            # + margin
    try:
        cap = pltpu.get_tpu_info().vmem_capacity_bytes - (16 << 20)
    except Exception:
        cap = 48 << 20                                      # safe for v7x
    return int(min(max(want, 32 << 20), max(cap, 32 << 20)))


def l1_chamfer_loss(array1, array2, *, tn_target=512, tm_target=2048,
                    use_mxu=True):
    """array1: (B, N, 3) f32, array2: (B, M, 3) f32 -> scalar f32 loss."""
    B, N, D = array1.shape
    B2, M, D2 = array2.shape
    assert D == 3 and D2 == 3 and B == B2
    array1 = array1.astype(jnp.float32)
    array2 = array2.astype(jnp.float32)

    tn_target = max(8, (tn_target // 8) * 8)
    tm_target = max(128, (tm_target // 128) * 128)

    tn = min(tn_target, _round_up(N, 8))       # sublane tile, multiple of 8
    Np = _round_up(N, tn)
    tm = min(tm_target, _round_up(M, 128))     # lane tile, multiple of 128
    Mp = _round_up(M, tm)
    n_tiles = Np // tn
    m_tiles = Mp // tm

    # Pad with duplicates of point 0: duplicates never change nearest-neighbor
    # mins; phantom rows/lanes are masked out of the sqrt-sums in-kernel.
    if Np > N:
        array1 = jnp.concatenate(
            [array1, jnp.broadcast_to(array1[:, :1, :], (B, Np - N, 3))], axis=1)
    if Mp > M:
        array2 = jnp.concatenate(
            [array2, jnp.broadcast_to(array2[:, :1, :], (B, Mp - M, 3))], axis=1)

    # Augmented operands (layout plumbing in the wrapper):
    #   xa = [x, 1, ||x||^2, 0, 0, 0]      (B, Np, 8)
    #   ya = [-2*y ; ||y||^2 ; 0 x4]^T     (B, 8, Mp)  lane-dense
    x_sq = jnp.sum(array1 * array1, axis=-1, keepdims=True)
    xa = jnp.concatenate(
        [array1, jnp.ones((B, Np, 1), jnp.float32), x_sq,
         jnp.zeros((B, Np, 3), jnp.float32)], axis=-1)
    y_sq = jnp.sum(array2 * array2, axis=-1, keepdims=True)
    ya = jnp.concatenate(
        [-2.0 * array2, y_sq, jnp.zeros((B, Mp, 4), jnp.float32)], axis=-1)
    ya = jnp.transpose(ya, (0, 2, 1))                       # (B, 8, Mp)

    kernel = functools.partial(
        _chamfer_kernel, n_valid=N, m_valid=M,
        mask_n=(Np != N), mask_m=(Mp != M), use_mxu=use_mxu)

    out = pl.pallas_call(
        kernel,
        out_shape=jax.ShapeDtypeStruct((B, 8, 128), jnp.float32),
        grid_spec=pltpu.PrefetchScalarGridSpec(
            num_scalar_prefetch=0,
            grid=(B, n_tiles, m_tiles),
            in_specs=[
                pl.BlockSpec((1, tn, 8), lambda b, n, m: (b, n, 0)),
                pl.BlockSpec((1, 8, tm), lambda b, n, m: (b, 0, m)),
            ],
            out_specs=pl.BlockSpec((1, 8, 128), lambda b, n, m: (b, 0, 0)),
            scratch_shapes=[
                pltpu.VMEM((tn, 128), jnp.float32),           # dist1 lane partials
                pltpu.VMEM((m_tiles, 8, tm), jnp.float32),    # dist2 sublane partials
                pltpu.VMEM((1, 1), jnp.float32),              # sum sqrt(dist1)
                pltpu.VMEM((1, 128), jnp.float32),            # sum sqrt(dist2) lanes
            ],
        ),
        compiler_params=pltpu.CompilerParams(
            dimension_semantics=("parallel", "arbitrary", "arbitrary"),
            vmem_limit_bytes=_vmem_limit_bytes(tn, tm, m_tiles),
        ),
    )(xa, ya)

    s1 = out[:, 0, 0]                               # (B,) sum sqrt(dist1)
    s2 = out[:, 0, 1]                               # (B,) sum sqrt(dist2)
    mean1 = jnp.sum(s1) / (B * N)
    mean2 = jnp.sum(s2) / (B * M)
    return (mean1 + mean2) * 0.5


def _reference_loss(array1, array2):
    # Pure-JAX reference mirroring the PyTorch semantics.
    d = jnp.sum((array1[:, :, None, :] - array2[:, None, :, :]) ** 2, axis=-1)
    dist1 = jnp.min(d, axis=2)   # (B, N)
    dist2 = jnp.min(d, axis=1)   # (B, M)
    return (jnp.mean(jnp.sqrt(dist1)) + jnp.mean(jnp.sqrt(dist2))) / 2.0


if __name__ == "__main__":
    key = jax.random.PRNGKey(0)
    k1, k2 = jax.random.split(key)
    B, N, M = 2, 256, 512
    a1 = jax.random.normal(k1, (B, N, 3), dtype=jnp.float32)
    a2 = jax.random.normal(k2, (B, M, 3), dtype=jnp.float32)
    ref = _reference_loss(a1, a2)

    # Default (MXU path, single tile at this size).
    loss = jax.block_until_ready(jax.jit(l1_chamfer_loss)(a1, a2))
    assert jnp.allclose(loss, ref, rtol=1e-3, atol=1e-4), (loss, ref)

    # Exact (cancellation-safe) VPU path behind the flag.
    loss_exact = jax.block_until_ready(
        jax.jit(functools.partial(l1_chamfer_loss, use_mxu=False))(a1, a2))
    assert jnp.allclose(loss_exact, ref, rtol=1e-3, atol=1e-5), (loss_exact, ref)

    # Forced multi-tile run to exercise the running-min / accumulator paths.
    loss_tiled = jax.block_until_ready(
        jax.jit(functools.partial(l1_chamfer_loss,
                                  tn_target=128, tm_target=128))(a1, a2))
    assert jnp.allclose(loss_tiled, ref, rtol=1e-3, atol=1e-4), (loss_tiled, ref)

    # Non-divisible shapes exercise the pad-with-duplicates + masking path.
    N2, M2 = 250, 300
    b1 = jax.random.normal(k1, (B, N2, 3), dtype=jnp.float32)
    b2 = jax.random.normal(k2, (B, M2, 3), dtype=jnp.float32)
    ref2 = _reference_loss(b1, b2)
    loss_pad = jax.block_until_ready(
        jax.jit(functools.partial(l1_chamfer_loss,
                                  tn_target=64, tm_target=128))(b1, b2))
    assert jnp.allclose(loss_pad, ref2, rtol=1e-3, atol=1e-4), (loss_pad, ref2)

    print("KERNEL_OK")
</pallas_src>

<mosaic_0001>
module attributes {stable_mosaic.version = 11 : i64} {
  func.func @_chamfer_kernel(%arg0: i32, %arg1: i32, %arg2: i32, %arg3: memref<1x256x8xf32, #tpu.memory_space<vmem>>, %arg4: memref<1x8x512xf32, #tpu.memory_space<vmem>>, %arg5: memref<1x8x128xf32, #tpu.memory_space<vmem>>, %arg6: memref<256x128xf32, #tpu.memory_space<vmem>>, %arg7: memref<1x8x512xf32, #tpu.memory_space<vmem>>, %arg8: memref<1x1xf32, #tpu.memory_space<vmem>>, %arg9: memref<1x128xf32, #tpu.memory_space<vmem>>) attributes {dimension_semantics = [#tpu.dimension_semantics<parallel>, #tpu.dimension_semantics<arbitrary>, #tpu.dimension_semantics<arbitrary>], iteration_bounds = array<i64: 2, 1, 1>, scalar_prefetch = 0 : i64, scratch_operands = 4 : i64, tpu.core_type = #tpu.core_type<tc>, window_params = [{transform_indices = @transform_0, window_bounds = array<i64: 1, 256, 8>}, {transform_indices = @transform_1, window_bounds = array<i64: 1, 8, 512>}, {transform_indices = @transform_2, window_bounds = array<i64: 1, 8, 128>}]} {
    %c0 = arith.constant 0 : index
    %c0_0 = arith.constant 0 : index
    %c0_1 = arith.constant 0 : index
    %0 = vector.load %arg3[%c0, %c0_0, %c0_1] : memref<1x256x8xf32, #tpu.memory_space<vmem>>, vector<1x256x8xf32>
    %1 = vector.shape_cast %0 : vector<1x256x8xf32> to vector<256x8xf32>
    %c0_2 = arith.constant 0 : index
    %c0_3 = arith.constant 0 : index
    %c0_4 = arith.constant 0 : index
    %2 = vector.load %arg4[%c0_2, %c0_3, %c0_4] : memref<1x8x512xf32, #tpu.memory_space<vmem>>, vector<1x8x512xf32>
    %3 = vector.shape_cast %2 : vector<1x8x512xf32> to vector<8x512xf32>
    %c0_i32 = arith.constant 0 : i32
    %4 = arith.cmpi eq, %arg1, %c0_i32 : i32
    %c0_i32_5 = arith.constant 0 : i32
    %5 = arith.cmpi eq, %arg2, %c0_i32_5 : i32
    %6 = arith.andi %4, %5 : i1
    %7 = arith.extui %6 : i1 to i32
    %c0_i32_6 = arith.constant 0 : i32
    %8 = arith.cmpi ne, %7, %c0_i32_6 : i32
    scf.if %8 {
      %cst_26 = arith.constant 0.000000e+00 : f32
      %111 = vector.broadcast %cst_26 : f32 to vector<1x1xf32>
      %c0_27 = arith.constant 0 : index
      %c0_28 = arith.constant 0 : index
      %112 = vector.load %arg8[%c0_27, %c0_28] : memref<1x1xf32, #tpu.memory_space<vmem>>, vector<1x1xf32>
      tpu.vector_store %arg8[%c0_27, %c0_28], %111 {strides = array<i32>} : memref<1x1xf32, #tpu.memory_space<vmem>>, vector<1x1xf32>,
      %cst_29 = arith.constant 0.000000e+00 : f32
      %113 = vector.broadcast %cst_29 : f32 to vector<1x128xf32>
      %c0_30 = arith.constant 0 : index
      %c0_31 = arith.constant 0 : index
      %114 = vector.load %arg9[%c0_30, %c0_31] : memref<1x128xf32, #tpu.memory_space<vmem>>, vector<1x128xf32>
      tpu.vector_store %arg9[%c0_30, %c0_31], %113 {strides = array<i32>} : memref<1x128xf32, #tpu.memory_space<vmem>>, vector<1x128xf32>,
    } else {
    }
    %cst = arith.constant dense<0.000000e+00> : vector<256x512xf32>
    %9 = tpu.matmul %1, %3, %cst {dimension_numbers = #tpu.dot_dimension_numbers<[1], [0], [0], [1], [0, 0, 1, 1], [], []>} : vector<256x8xf32>, vector<8x512xf32>, vector<256x512xf32> -> vector<256x512xf32>
    %10 = vector.extract_strided_slice %1 {offsets = [0, 4], sizes = [256, 1], strides = [1, 1]} : vector<256x8xf32> to vector<256x1xf32>
    %11 = vector.broadcast %10 : vector<256x1xf32> to vector<256x512xf32>
    %12 = arith.addf %9, %11 : vector<256x512xf32>
    %13 = vector.extract_strided_slice %12 {offsets = [0, 0], sizes = [256, 128], strides = [1, 1]} : vector<256x512xf32> to vector<256x128xf32>
    %14 = vector.extract_strided_slice %12 {offsets = [0, 128], sizes = [256, 128], strides = [1, 1]} : vector<256x512xf32> to vector<256x128xf32>
    %15 = arith.minimumf %13, %14 : vector<256x128xf32>
    %16 = vector.extract_strided_slice %12 {offsets = [0, 256], sizes = [256, 128], strides = [1, 1]} : vector<256x512xf32> to vector<256x128xf32>
    %17 = arith.minimumf %15, %16 : vector<256x128xf32>
    %18 = vector.extract_strided_slice %12 {offsets = [0, 384], sizes = [256, 128], strides = [1, 1]} : vector<256x512xf32> to vector<256x128xf32>
    %19 = arith.minimumf %17, %18 : vector<256x128xf32>
    %c0_i32_7 = arith.constant 0 : i32
    %20 = arith.cmpi eq, %arg2, %c0_i32_7 : i32
    %21 = arith.extui %20 : i1 to i32
    %c0_i32_8 = arith.constant 0 : i32
    %22 = arith.cmpi ne, %21, %c0_i32_8 : i32
    scf.if %22 {
      %cst_26 = arith.constant 0x7F800000 : f32
      %111 = vector.broadcast %cst_26 : f32 to vector<256x128xf32>
      %c0_27 = arith.constant 0 : index
      %c0_28 = arith.constant 0 : index
      %112 = vector.load %arg6[%c0_27, %c0_28] : memref<256x128xf32, #tpu.memory_space<vmem>>, vector<256x128xf32>
      tpu.vector_store %arg6[%c0_27, %c0_28], %111 {strides = array<i32>} : memref<256x128xf32, #tpu.memory_space<vmem>>, vector<256x128xf32>,
    } else {
    }
    %c0_9 = arith.constant 0 : index
    %c0_10 = arith.constant 0 : index
    %23 = vector.load %arg6[%c0_9, %c0_10] : memref<256x128xf32, #tpu.memory_space<vmem>>, vector<256x128xf32>
    %24 = arith.minimumf %23, %19 : vector<256x128xf32>
    %c0_11 = arith.constant 0 : index
    %c0_12 = arith.constant 0 : index
    %25 = vector.load %arg6[%c0_11, %c0_12] : memref<256x128xf32, #tpu.memory_space<vmem>>, vector<256x128xf32>
    tpu.vector_store %arg6[%c0_11, %c0_12], %24 {strides = array<i32>} : memref<256x128xf32, #tpu.memory_space<vmem>>, vector<256x128xf32>,
    %26 = vector.extract_strided_slice %12 {offsets = [0, 0], sizes = [8, 512], strides = [1, 1]} : vector<256x512xf32> to vector<8x512xf32>
    %27 = vector.extract_strided_slice %12 {offsets = [8, 0], sizes = [8, 512], strides = [1, 1]} : vector<256x512xf32> to vector<8x512xf32>
    %28 = arith.minimumf %26, %27 : vector<8x512xf32>
    %29 = vector.extract_strided_slice %12 {offsets = [16, 0], sizes = [8, 512], strides = [1, 1]} : vector<256x512xf32> to vector<8x512xf32>
    %30 = arith.minimumf %28, %29 : vector<8x512xf32>
    %31 = vector.extract_strided_slice %12 {offsets = [24, 0], sizes = [8, 512], strides = [1, 1]} : vector<256x512xf32> to vector<8x512xf32>
    %32 = arith.minimumf %30, %31 : vector<8x512xf32>
    %33 = vector.extract_strided_slice %12 {offsets = [32, 0], sizes = [8, 512], strides = [1, 1]} : vector<256x512xf32> to vector<8x512xf32>
    %34 = arith.minimumf %32, %33 : vector<8x512xf32>
    %35 = vector.extract_strided_slice %12 {offsets = [40, 0], sizes = [8, 512], strides = [1, 1]} : vector<256x512xf32> to vector<8x512xf32>
    %36 = arith.minimumf %34, %35 : vector<8x512xf32>
    %37 = vector.extract_strided_slice %12 {offsets = [48, 0], sizes = [8, 512], strides = [1, 1]} : vector<256x512xf32> to vector<8x512xf32>
    %38 = arith.minimumf %36, %37 : vector<8x512xf32>
    %39 = vector.extract_strided_slice %12 {offsets = [56, 0], sizes = [8, 512], strides = [1, 1]} : vector<256x512xf32> to vector<8x512xf32>
    %40 = arith.minimumf %38, %39 : vector<8x512xf32>
    %41 = vector.extract_strided_slice %12 {offsets = [64, 0], sizes = [8, 512], strides = [1, 1]} : vector<256x512xf32> to vector<8x512xf32>
    %42 = arith.minimumf %40, %41 : vector<8x512xf32>
    %43 = vector.extract_strided_slice %12 {offsets = [72, 0], sizes = [8, 512], strides = [1, 1]} : vector<256x512xf32> to vector<8x512xf32>
    %44 = arith.minimumf %42, %43 : vector<8x512xf32>
    %45 = vector.extract_strided_slice %12 {offsets = [80, 0], sizes = [8, 512], strides = [1, 1]} : vector<256x512xf32> to vector<8x512xf32>
    %46 = arith.minimumf %44, %45 : vector<8x512xf32>
    %47 = vector.extract_strided_slice %12 {offsets = [88, 0], sizes = [8, 512], strides = [1, 1]} : vector<256x512xf32> to vector<8x512xf32>
    %48 = arith.minimumf %46, %47 : vector<8x512xf32>
    %49 = vector.extract_strided_slice %12 {offsets = [96, 0], sizes = [8, 512], strides = [1, 1]} : vector<256x512xf32> to vector<8x512xf32>
    %50 = arith.minimumf %48, %49 : vector<8x512xf32>
    %51 = vector.extract_strided_slice %12 {offsets = [104, 0], sizes = [8, 512], strides = [1, 1]} : vector<256x512xf32> to vector<8x512xf32>
    %52 = arith.minimumf %50, %51 : vector<8x512xf32>
    %53 = vector.extract_strided_slice %12 {offsets = [112, 0], sizes = [8, 512], strides = [1, 1]} : vector<256x512xf32> to vector<8x512xf32>
    %54 = arith.minimumf %52, %53 : vector<8x512xf32>
    %55 = vector.extract_strided_slice %12 {offsets = [120, 0], sizes = [8, 512], strides = [1, 1]} : vector<256x512xf32> to vector<8x512xf32>
    %56 = arith.minimumf %54, %55 : vector<8x512xf32>
    %57 = vector.extract_strided_slice %12 {offsets = [128, 0], sizes = [8, 512], strides = [1, 1]} : vector<256x512xf32> to vector<8x512xf32>
    %58 = arith.minimumf %56, %57 : vector<8x512xf32>
    %59 = vector.extract_strided_slice %12 {offsets = [136, 0], sizes = [8, 512], strides = [1, 1]} : vector<256x512xf32> to vector<8x512xf32>
    %60 = arith.minimumf %58, %59 : vector<8x512xf32>
    %61 = vector.extract_strided_slice %12 {offsets = [144, 0], sizes = [8, 512], strides = [1, 1]} : vector<256x512xf32> to vector<8x512xf32>
    %62 = arith.minimumf %60, %61 : vector<8x512xf32>
    %63 = vector.extract_strided_slice %12 {offsets = [152, 0], sizes = [8, 512], strides = [1, 1]} : vector<256x512xf32> to vector<8x512xf32>
    %64 = arith.minimumf %62, %63 : vector<8x512xf32>
    %65 = vector.extract_strided_slice %12 {offsets = [160, 0], sizes = [8, 512], strides = [1, 1]} : vector<256x512xf32> to vector<8x512xf32>
    %66 = arith.minimumf %64, %65 : vector<8x512xf32>
    %67 = vector.extract_strided_slice %12 {offsets = [168, 0], sizes = [8, 512], strides = [1, 1]} : vector<256x512xf32> to vector<8x512xf32>
    %68 = arith.minimumf %66, %67 : vector<8x512xf32>
    %69 = vector.extract_strided_slice %12 {offsets = [176, 0], sizes = [8, 512], strides = [1, 1]} : vector<256x512xf32> to vector<8x512xf32>
    %70 = arith.minimumf %68, %69 : vector<8x512xf32>
    %71 = vector.extract_strided_slice %12 {offsets = [184, 0], sizes = [8, 512], strides = [1, 1]} : vector<256x512xf32> to vector<8x512xf32>
    %72 = arith.minimumf %70, %71 : vector<8x512xf32>
    %73 = vector.extract_strided_slice %12 {offsets = [192, 0], sizes = [8, 512], strides = [1, 1]} : vector<256x512xf32> to vector<8x512xf32>
    %74 = arith.minimumf %72, %73 : vector<8x512xf32>
    %75 = vector.extract_strided_slice %12 {offsets = [200, 0], sizes = [8, 512], strides = [1, 1]} : vector<256x512xf32> to vector<8x512xf32>
    %76 = arith.minimumf %74, %75 : vector<8x512xf32>
    %77 = vector.extract_strided_slice %12 {offsets = [208, 0], sizes = [8, 512], strides = [1, 1]} : vector<256x512xf32> to vector<8x512xf32>
    %78 = arith.minimumf %76, %77 : vector<8x512xf32>
    %79 = vector.extract_strided_slice %12 {offsets = [216, 0], sizes = [8, 512], strides = [1, 1]} : vector<256x512xf32> to vector<8x512xf32>
    %80 = arith.minimumf %78, %79 : vector<8x512xf32>
    %81 = vector.extract_strided_slice %12 {offsets = [224, 0], sizes = [8, 512], strides = [1, 1]} : vector<256x512xf32> to vector<8x512xf32>
    %82 = arith.minimumf %80, %81 : vector<8x512xf32>
    %83 = vector.extract_strided_slice %12 {offsets = [232, 0], sizes = [8, 512], strides = [1, 1]} : vector<256x512xf32> to vector<8x512xf32>
    %84 = arith.minimumf %82, %83 : vector<8x512xf32>
    %85 = vector.extract_strided_slice %12 {offsets = [240, 0], sizes = [8, 512], strides = [1, 1]} : vector<256x512xf32> to vector<8x512xf32>
    %86 = arith.minimumf %84, %85 : vector<8x512xf32>
    %87 = vector.extract_strided_slice %12 {offsets = [248, 0], sizes = [8, 512], strides = [1, 1]} : vector<256x512xf32> to vector<8x512xf32>
    %88 = arith.minimumf %86, %87 : vector<8x512xf32>
    %c0_i32_13 = arith.constant 0 : i32
    %89 = arith.cmpi eq, %arg1, %c0_i32_13 : i32
    %90 = arith.extui %89 : i1 to i32
    %c0_i32_14 = arith.constant 0 : i32
    %91 = arith.cmpi ne, %90, %c0_i32_14 : i32
    scf.if %91 {
      %cst_26 = arith.constant 0x7F800000 : f32
      %111 = vector.broadcast %cst_26 : f32 to vector<8x512xf32>
      %112 = arith.index_cast %arg2 : i32 to index
      %c0_27 = arith.constant 0 : index
      %c0_28 = arith.constant 0 : index
      %113 = vector.load %arg7[%112, %c0_27, %c0_28] : memref<1x8x512xf32, #tpu.memory_space<vmem>>, vector<1x8x512xf32>
      %114 = vector.shape_cast %113 : vector<1x8x512xf32> to vector<8x512xf32>
      %115 = vector.shape_cast %111 : vector<8x512xf32> to vector<1x8x512xf32>
      tpu.vector_store %arg7[%112, %c0_27, %c0_28], %115 {strides = array<i32>} : memref<1x8x512xf32, #tpu.memory_space<vmem>>, vector<1x8x512xf32>,
    } else {
    }
    %92 = arith.index_cast %arg2 : i32 to index
    %c0_15 = arith.constant 0 : index
    %c0_16 = arith.constant 0 : index
    %93 = vector.load %arg7[%92, %c0_15, %c0_16] : memref<1x8x512xf32, #tpu.memory_space<vmem>>, vector<1x8x512xf32>
    %94 = vector.shape_cast %93 : vector<1x8x512xf32> to vector<8x512xf32>
    %95 = arith.minimumf %94, %88 : vector<8x512xf32>
    %96 = arith.index_cast %arg2 : i32 to index
    %c0_17 = arith.constant 0 : index
    %c0_18 = arith.constant 0 : index
    %97 = vector.load %arg7[%96, %c0_17, %c0_18] : memref<1x8x512xf32, #tpu.memory_space<vmem>>, vector<1x8x512xf32>
    %98 = vector.shape_cast %97 : vector<1x8x512xf32> to vector<8x512xf32>
    %99 = vector.shape_cast %95 : vector<8x512xf32> to vector<1x8x512xf32>
    tpu.vector_store %arg7[%96, %c0_17, %c0_18], %99 {strides = array<i32>} : memref<1x8x512xf32, #tpu.memory_space<vmem>>, vector<1x8x512xf32>,
    %c0_i32_19 = arith.constant 0 : i32
    %100 = arith.cmpi eq, %arg2, %c0_i32_19 : i32
    %101 = arith.extui %100 : i1 to i32
    %c0_i32_20 = arith.constant 0 : i32
    %102 = arith.cmpi ne, %101, %c0_i32_20 : i32
    scf.if %102 {
      %c0_26 = arith.constant 0 : index
      %c0_27 = arith.constant 0 : index
      %111 = vector.load %arg6[%c0_26, %c0_27] : memref<256x128xf32, #tpu.memory_space<vmem>>, vector<256x128xf32>
      %cst_28 = arith.constant dense<0x7F800000> : vector<256xf32>
      %112 = vector.multi_reduction <minimumf>, %111, %cst_28 [1] : vector<256x128xf32> to vector<256xf32>
      %113 = vector.shape_cast %112 : vector<256xf32> to vector<256x1xf32>
      %cst_29 = arith.constant 0.000000e+00 : f32
      %114 = vector.broadcast %cst_29 : f32 to vector<256x1xf32>
      %115 = arith.maximumf %113, %114 : vector<256x1xf32>
      %116 = math.sqrt %115 : vector<256x1xf32>
      %c0_30 = arith.constant 0 : index
      %c0_31 = arith.constant 0 : index
      %117 = vector.load %arg8[%c0_30, %c0_31] : memref<1x1xf32, #tpu.memory_space<vmem>>, vector<1x1xf32>
      %118 = vector.shape_cast %116 : vector<256x1xf32> to vector<1x256x1xf32>
      %cst_32 = arith.constant dense<0.000000e+00> : vector<1xf32>
      %119 = vector.multi_reduction <add>, %118, %cst_32 [1, 2] : vector<1x256x1xf32> to vector<1xf32>
      %120 = vector.shape_cast %119 : vector<1xf32> to vector<1x1x1xf32>
      %121 = vector.extract %120[0, 0, 0] : f32 from vector<1x1x1xf32>
      %122 = vector.broadcast %121 : f32 to vector<1x1xf32>
      %123 = arith.addf %117, %122 : vector<1x1xf32>
      %c0_33 = arith.constant 0 : index
      %c0_34 = arith.constant 0 : index
      %124 = vector.load %arg8[%c0_33, %c0_34] : memref<1x1xf32, #tpu.memory_space<vmem>>, vector<1x1xf32>
      tpu.vector_store %arg8[%c0_33, %c0_34], %123 {strides = array<i32>} : memref<1x1xf32, #tpu.memory_space<vmem>>, vector<1x1xf32>,
    } else {
    }
    %c0_i32_21 = arith.constant 0 : i32
    %103 = arith.cmpi eq, %arg1, %c0_i32_21 : i32
    %104 = arith.extui %103 : i1 to i32
    %c0_i32_22 = arith.constant 0 : i32
    %105 = arith.cmpi ne, %104, %c0_i32_22 : i32
    scf.if %105 {
      %111 = arith.index_cast %arg2 : i32 to index
      %c0_26 = arith.constant 0 : index
      %c0_27 = arith.constant 0 : index
      %112 = vector.load %arg7[%111, %c0_26, %c0_27] : memref<1x8x512xf32, #tpu.memory_space<vmem>>, vector<1x8x512xf32>
      %113 = vector.shape_cast %112 : vector<1x8x512xf32> to vector<8x512xf32>
      %cst_28 = arith.constant dense<0x7F800000> : vector<512xf32>
      %114 = vector.multi_reduction <minimumf>, %113, %cst_28 [0] : vector<8x512xf32> to vector<512xf32>
      %115 = vector.shape_cast %114 : vector<512xf32> to vector<1x512xf32>
      %cst_29 = arith.constant 0.000000e+00 : f32
      %116 = vector.broadcast %cst_29 : f32 to vector<1x512xf32>
      %117 = arith.maximumf %115, %116 : vector<1x512xf32>
      %118 = math.sqrt %117 : vector<1x512xf32>
      %119 = vector.extract_strided_slice %118 {offsets = [0, 0], sizes = [1, 128], strides = [1, 1]} : vector<1x512xf32> to vector<1x128xf32>
      %120 = vector.extract_strided_slice %118 {offsets = [0, 128], sizes = [1, 128], strides = [1, 1]} : vector<1x512xf32> to vector<1x128xf32>
      %121 = arith.addf %119, %120 : vector<1x128xf32>
      %122 = vector.extract_strided_slice %118 {offsets = [0, 256], sizes = [1, 128], strides = [1, 1]} : vector<1x512xf32> to vector<1x128xf32>
      %123 = arith.addf %121, %122 : vector<1x128xf32>
      %124 = vector.extract_strided_slice %118 {offsets = [0, 384], sizes = [1, 128], strides = [1, 1]} : vector<1x512xf32> to vector<1x128xf32>
      %125 = arith.addf %123, %124 : vector<1x128xf32>
      %c0_30 = arith.constant 0 : index
      %c0_31 = arith.constant 0 : index
      %126 = vector.load %arg9[%c0_30, %c0_31] : memref<1x128xf32, #tpu.memory_space<vmem>>, vector<1x128xf32>
      %127 = arith.addf %126, %125 : vector<1x128xf32>
      %c0_32 = arith.constant 0 : index
      %c0_33 = arith.constant 0 : index
      %128 = vector.load %arg9[%c0_32, %c0_33] : memref<1x128xf32, #tpu.memory_space<vmem>>, vector<1x128xf32>
      tpu.vector_store %arg9[%c0_32, %c0_33], %127 {strides = array<i32>} : memref<1x128xf32, #tpu.memory_space<vmem>>, vector<1x128xf32>,
    } else {
    }
    %c0_i32_23 = arith.constant 0 : i32
    %106 = arith.cmpi eq, %arg1, %c0_i32_23 : i32
    %c0_i32_24 = arith.constant 0 : i32
    %107 = arith.cmpi eq, %arg2, %c0_i32_24 : i32
    %108 = arith.andi %106, %107 : i1
    %109 = arith.extui %108 : i1 to i32
    %c0_i32_25 = arith.constant 0 : i32
    %110 = arith.cmpi ne, %109, %c0_i32_25 : i32
    scf.if %110 {
      %c0_26 = arith.constant 0 : index
      %c0_27 = arith.constant 0 : index
      %111 = vector.load %arg8[%c0_26, %c0_27] : memref<1x1xf32, #tpu.memory_space<vmem>>, vector<1x1xf32>
      %112 = vector.shape_cast %111 : vector<1x1xf32> to vector<1x1x1xf32>
      %cst_28 = arith.constant dense<0.000000e+00> : vector<1xf32>
      %113 = vector.multi_reduction <add>, %112, %cst_28 [1, 2] : vector<1x1x1xf32> to vector<1xf32>
      %114 = vector.shape_cast %113 : vector<1xf32> to vector<1x1x1xf32>
      %115 = vector.extract %114[0, 0, 0] : f32 from vector<1x1x1xf32>
      %c0_29 = arith.constant 0 : index
      %c0_30 = arith.constant 0 : index
      %116 = vector.load %arg9[%c0_29, %c0_30] : memref<1x128xf32, #tpu.memory_space<vmem>>, vector<1x128xf32>
      %117 = vector.shape_cast %116 : vector<1x128xf32> to vector<1x1x128xf32>
      %cst_31 = arith.constant dense<0.000000e+00> : vector<1xf32>
      %118 = vector.multi_reduction <add>, %117, %cst_31 [1, 2] : vector<1x1x128xf32> to vector<1xf32>
      %119 = vector.shape_cast %118 : vector<1xf32> to vector<1x1x1xf32>
      %120 = vector.extract %119[0, 0, 0] : f32 from vector<1x1x1xf32>
      %121 = tpu.iota {dimensions = array<i32: 0>} : vector<8x128xi32>
      %122 = tpu.iota {dimensions = array<i32: 1>} : vector<8x128xi32>
      %c0_i32_32 = arith.constant 0 : i32
      %123 = vector.broadcast %c0_i32_32 : i32 to vector<8x128xi32>
      %124 = arith.cmpi eq, %121, %123 : vector<8x128xi32>
      %c0_i32_33 = arith.constant 0 : i32
      %125 = vector.broadcast %c0_i32_33 : i32 to vector<8x128xi32>
      %126 = arith.cmpi eq, %122, %125 : vector<8x128xi32>
      %127 = arith.andi %124, %126 : vector<8x128xi1>
      %c0_i32_34 = arith.constant 0 : i32
      %128 = vector.broadcast %c0_i32_34 : i32 to vector<8x128xi32>
      %129 = arith.cmpi eq, %121, %128 : vector<8x128xi32>
      %c1_i32 = arith.constant 1 : i32
      %130 = vector.broadcast %c1_i32 : i32 to vector<8x128xi32>
      %131 = arith.cmpi eq, %122, %130 : vector<8x128xi32>
      %132 = arith.andi %129, %131 : vector<8x128xi1>
      %cst_35 = arith.constant 0.000000e+00 : f32
      %133 = vector.broadcast %120 : f32 to vector<8x128xf32>
      %134 = vector.broadcast %cst_35 : f32 to vector<8x128xf32>
      %135 = arith.select %132, %133, %134 : vector<8x128xi1>, vector<8x128xf32>
      %136 = vector.broadcast %115 : f32 to vector<8x128xf32>
      %137 = arith.select %127, %136, %135 : vector<8x128xi1>, vector<8x128xf32>
      %c0_36 = arith.constant 0 : index
      %c0_37 = arith.constant 0 : index
      %c0_38 = arith.constant 0 : index
      %138 = vector.load %arg5[%c0_36, %c0_37, %c0_38] : memref<1x8x128xf32, #tpu.memory_space<vmem>>, vector<1x8x128xf32>
      %139 = vector.shape_cast %138 : vector<1x8x128xf32> to vector<8x128xf32>
      %140 = vector.shape_cast %137 : vector<8x128xf32> to vector<1x8x128xf32>
      tpu.vector_store %arg5[%c0_36, %c0_37, %c0_38], %140 {strides = array<i32>} : memref<1x8x128xf32, #tpu.memory_space<vmem>>, vector<1x8x128xf32>,
    } else {
    }
    return
  }
  func.func @transform_0(%arg0: i32, %arg1: i32, %arg2: i32) -> (i32, i32, i32) {
    %c0_i32 = arith.constant 0 : i32
    %c0_i32_0 = arith.constant 0 : i32
    return %arg0, %arg1, %c0_i32 : i32, i32, i32
  }
  func.func @transform_1(%arg0: i32, %arg1: i32, %arg2: i32) -> (i32, i32, i32) {
    %c0_i32 = arith.constant 0 : i32
    %c0_i32_0 = arith.constant 0 : i32
    return %arg0, %c0_i32, %arg2 : i32, i32, i32
  }
  func.func @transform_2(%arg0: i32, %arg1: i32, %arg2: i32) -> (i32, i32, i32) {
    %c0_i32 = arith.constant 0 : i32
    %c0_i32_0 = arith.constant 0 : i32
    %c0_i32_1 = arith.constant 0 : i32
    return %arg0, %c0_i32, %c0_i32_0 : i32, i32, i32
  }
}

</mosaic_0001>

<bundles_post_ra>
// kernel: l1_chamfer_loss.1
= control target key start
LH: loop header
LB: loop body
LE: loop exit
PB: predicated region body
PF: predicated region fallthrough
CT: control target
= control target key end

     0   :  { %s2406_s9 = smov 0   ;;  %s2408_s10 = smov 0   ;;  %s3473_s0 = inlined_call_operand.vmem [shape: f32[2,256,8], index: 0, kind: input, shape index: {}]   ;;  %s3474_s1 = inlined_call_operand.vmem [shape: f32[2,8,512], index: 1, kind: input, shape index: {}]   ;;  %s3475_s2 = inlined_call_operand.vmem [shape: f32[2,8,128], index: 2, kind: output, shape index: {}]  }
   0x1   :  { %s2410_s11 = smov 0  }
   0x2 LB: > { %s31_s12 = sadd.s32 1, %s2383_s10  ;;  %p2120_p0 = scmp.ge.s32.totalorder %s2387_s11, 1  ;;  %s2387_s11 = sphi %s2410_s11, %s12_s11   ;;  %s2383_s10 = sphi %s2408_s10, %s3477_s10   ;;  %s2379_s9 = sphi %s2406_s9, %s3476_s9  }
   0x3   : > { %p33_p1 = scmp.ge.s32.totalorder %s31_s12, 2  ;;  %p155_p2 = scmp.lt.s32.totalorder %s2387_s11, 3 }
   0x5   : > { %s3479_s12 = smov (%p33_p1, %s31_s12), 0  ;;  %p156_p3 = pnand %p2120_p0, %p155_p2 }
   0x6   : > { %p190_p4 = scmp.lt.s32.totalorder (!%p156_p3), %s2379_s9, 1 }
   0x7   : > { %159 = sbr.rel (%p156_p3) target bundleno = 791 (0x317), region = 28 }
   0xc   : > { %v2389_v0 = vmov 4   ;;  %s3481_s9 = smov (!%p190_p4, %s2379_s9), 1  ;;  %vm418_vm0 = vcmask 64512   ;;  %vm1827_vm9 = vcmask 7168  }
   0xd   : > { %2290 = vset.pattern.permute.xlu0 %v2389_v0  ;;  %2291 = vset.pattern.permute.xlu1 %v2389_v0  ;;  %s2256_s13 = sshll.u32 %s3481_s9, 8  ;;  %s2257_s14 = sshll.u32 %s3481_s9, 5 }
   0xe   : > { %2292 = vset.pattern.permute.xlu2 %v2389_v0  ;;  %s2431_s17 = scalar_lea.vmem %s3473_s0, %s2256_s13  ;;  %s207_s20 = scalar_lea.vmem %s3474_s1, %s2257_s14 }
   0xf   : > { %v245_v1 = vld [vmem:[%s207_s20] sm:$0xff]  ;;  %v246_v2 = vld [vmem:[%s207_s20 + $0x8] sm:$0xff]  ;;  %v247_v3 = vld [vmem:[%s207_s20 + $0x10] sm:$0xff]  ;;  %s2125_s22 = sshll.u32 %s3481_s9, 3 }
  0x10   : > { %498 = vmatpush.msra.mxu0 %v245_v1  ;;  %611 = vmatpush.msra.mxu1 %v246_v2  ;;  %v248_v4 = vld [vmem:[%s207_s20 + $0x18] sm:$0xff]  ;;  %v213_v5 = vld [vmem:[%s2431_s17] sm:$0xff]  ;;  %v215_v7 = vld [vmem:[%s2431_s17 + $0x10] sm:$0xff]  ;;  %s212_s27 = scalar_lea.vmem %s3475_s2, %s2125_s22 }
  0x11   : > { %724 = vmatpush.msra.mxu2 %v247_v3  ;;  %837 = vmatpush.msra.mxu3 %v248_v4  ;;  %v217_v6 = vld [vmem:[%s2431_s17 + $0x20] sm:$0xff]  ;;  %v214_v8 = vld [vmem:[%s2431_s17 + $0x8] sm:$0xff]  ;;  %v216_v10 = vld [vmem:[%s2431_s17 + $0x18] sm:$0xff] }
  0x12   : > { %2126 = vmatmul.msk.f32.vlgmr.msra.gmra.mxu0 %vm418_vm0, %v213_v5  ;;  %2158 = vmatmul.msk.f32.vlgmr.msra.gmra.mxu1 %vm418_vm0, %v213_v5  ;;  %v218_v9 = vld [vmem:[%s2431_s17 + $0x28] sm:$0xff]  ;;  %v220_v11 = vld [vmem:[%s2431_s17 + $0x38] sm:$0xff]  ;;  %v219_v12 = vld [vmem:[%s2431_s17 + $0x30] sm:$0xff] }
  0x13   : > { %2190 = vmatmul.msk.f32.vlgmr.msra.gmra.mxu2 %vm418_vm0, %v213_v5  ;;  %2222 = vmatmul.msk.f32.vlgmr.msra.gmra.mxu3 %vm418_vm0, %v213_v5  ;;  %v221_v13 = vld [vmem:[%s2431_s17 + $0x40] sm:$0xff]  ;;  %v2458_v14 = vld [vmem:[%s2431_s17 + $0x50] sm:$0xff]  ;;  %v2461_v15 = vld [vmem:[%s2431_s17 + $0x48] sm:$0xff] }
  0x14   : > { %260 = vperm.xlu0 %2290, %v213_v5   ;;  %270 = vperm.xlu1 %2291, %v215_v7   ;;  %v2466_v16 = vld [vmem:[%s2431_s17 + $0x58] sm:$0xff]  ;;  %v2474_v17 = vld [vmem:[%s2431_s17 + $0x68] sm:$0xff]  ;;  %v2477_v18 = vld [vmem:[%s2431_s17 + $0x60] sm:$0xff] }
  0x15   : > { %280 = vperm.xlu2 %2292, %v217_v6   ;;  %v2482_v19 = vld [vmem:[%s2431_s17 + $0x70] sm:$0xff]  ;;  %v2490_v20 = vld [vmem:[%s2431_s17 + $0x80] sm:$0xff]  ;;  %v2493_v21 = vld [vmem:[%s2431_s17 + $0x78] sm:$0xff] }
  0x16   : > { %v2498_v22 = vld [vmem:[%s2431_s17 + $0x88] sm:$0xff]  ;;  %v2506_v23 = vld [vmem:[%s2431_s17 + $0x98] sm:$0xff]  ;;  %v2509_v24 = vld [vmem:[%s2431_s17 + $0x90] sm:$0xff] }
  0x17   : > { %v2514_v25 = vld [vmem:[%s2431_s17 + $0xa0] sm:$0xff]  ;;  %v2522_v26 = vld [vmem:[%s2431_s17 + $0xb0] sm:$0xff]  ;;  %v2525_v27 = vld [vmem:[%s2431_s17 + $0xa8] sm:$0xff] }
  0x18   : > { %v2530_v28 = vld [vmem:[%s2431_s17 + $0xb8] sm:$0xff]  ;;  %v2541_v30 = vld [vmem:[%s2431_s17 + $0xc0] sm:$0xff]  ;;  %v2546_v31 = vld [vmem:[%s2431_s17 + $0xd0] sm:$0xff] }
  0x19   : > { %v2538_v29 = vld [vmem:[%s2431_s17 + $0xd8] sm:$0xff]  ;;  %v2554_v32 = vld [vmem:[%s2431_s17 + $0xf0] sm:$0xff]  ;;  %v2557_v33 = vld [vmem:[%s2431_s17 + $0xc8] sm:$0xff] }
  0x1a   : > { %2127 = vmatmul.msk.f32.gmra.mxu0 %vm418_vm0, %v214_v8  ;;  %2159 = vmatmul.msk.f32.gmra.mxu1 %vm418_vm0, %v214_v8  ;;  %v2564_v34 = vld [vmem:[%s2431_s17 + $0xe0] sm:$0xff]  ;;  %v2574_v35 = vld [vmem:[%s2431_s17 + $0xf8] sm:$0xff]  ;;  %v2581_v36 = vld [vmem:[%s2431_s17 + $0xe8] sm:$0xff] }
  0x1b   : > { %2191 = vmatmul.msk.f32.gmra.mxu2 %vm418_vm0, %v214_v8  ;;  %2223 = vmatmul.msk.f32.gmra.mxu3 %vm418_vm0, %v214_v8 }
  0x1c   : > { %265 = vperm.xlu0 %2290, %v214_v8   ;;  %275 = vperm.xlu1 %2291, %v216_v10  }
  0x1d   : > { %285 = vperm.xlu2 %2292, %v218_v9  }
  0x22   : > { %2128 = vmatmul.msk.f32.gmra.mxu0 %vm418_vm0, %v215_v7  ;;  %2160 = vmatmul.msk.f32.gmra.mxu1 %vm418_vm0, %v215_v7 }
  0x23   : > { %2192 = vmatmul.msk.f32.gmra.mxu2 %vm418_vm0, %v215_v7  ;;  %2224 = vmatmul.msk.f32.gmra.mxu3 %vm418_vm0, %v215_v7 }
  0x24   : > { %295 = vperm.xlu1 %2291, %v220_v11   ;;  %290 = vperm.xlu0 %2290, %v219_v12  }
  0x25   : > { %300 = vperm.xlu2 %2292, %v221_v13  }
  0x2a   : > { %2129 = vmatmul.msk.f32.gmra.mxu0 %vm418_vm0, %v216_v10  ;;  %2161 = vmatmul.msk.f32.gmra.mxu1 %vm418_vm0, %v216_v10 }
  0x2b   : > { %2193 = vmatmul.msk.f32.gmra.mxu2 %vm418_vm0, %v216_v10  ;;  %2225 = vmatmul.msk.f32.gmra.mxu3 %vm418_vm0, %v216_v10 }
  0x2c   : > { %310 = vperm.xlu1 %2291, %v2458_v14   ;;  %305 = vperm.xlu0 %2290, %v2461_v15  }
  0x2d   : > { %315 = vperm.xlu2 %2292, %v2466_v16  }
  0x32   : > { %2130 = vmatmul.msk.f32.gmra.mxu0 %vm418_vm0, %v217_v6  ;;  %2162 = vmatmul.msk.f32.gmra.mxu1 %vm418_vm0, %v217_v6 }
  0x33   : > { %2194 = vmatmul.msk.f32.gmra.mxu2 %vm418_vm0, %v217_v6  ;;  %2226 = vmatmul.msk.f32.gmra.mxu3 %vm418_vm0, %v217_v6 }
  0x34   : > { %325 = vperm.xlu1 %2291, %v2474_v17   ;;  %320 = vperm.xlu0 %2290, %v2477_v18  }
  0x35   : > { %330 = vperm.xlu2 %2292, %v2482_v19  }
  0x3a   : > { %2131 = vmatmul.msk.f32.gmra.mxu0 %vm418_vm0, %v218_v9  ;;  %2163 = vmatmul.msk.f32.gmra.mxu1 %vm418_vm0, %v218_v9 }
  0x3b   : > { %2195 = vmatmul.msk.f32.gmra.mxu2 %vm418_vm0, %v218_v9  ;;  %2227 = vmatmul.msk.f32.gmra.mxu3 %vm418_vm0, %v218_v9 }
  0x3c   : > { %340 = vperm.xlu1 %2291, %v2490_v20   ;;  %335 = vperm.xlu0 %2290, %v2493_v21  }
  0x3d   : > { %345 = vperm.xlu2 %2292, %v2498_v22  }
  0x42   : > { %2132 = vmatmul.msk.f32.gmra.mxu0 %vm418_vm0, %v219_v12  ;;  %2164 = vmatmul.msk.f32.gmra.mxu1 %vm418_vm0, %v219_v12 }
  0x43   : > { %2196 = vmatmul.msk.f32.gmra.mxu2 %vm418_vm0, %v219_v12  ;;  %2228 = vmatmul.msk.f32.gmra.mxu3 %vm418_vm0, %v219_v12 }
  0x44   : > { %355 = vperm.xlu1 %2291, %v2506_v23   ;;  %350 = vperm.xlu0 %2290, %v2509_v24  }
  0x45   : > { %360 = vperm.xlu2 %2292, %v2514_v25  }
  0x4a   : > { %2133 = vmatmul.msk.f32.gmra.mxu0 %vm418_vm0, %v220_v11  ;;  %2165 = vmatmul.msk.f32.gmra.mxu1 %vm418_vm0, %v220_v11 }
  0x4b   : > { %2197 = vmatmul.msk.f32.gmra.mxu2 %vm418_vm0, %v220_v11  ;;  %2229 = vmatmul.msk.f32.gmra.mxu3 %vm418_vm0, %v220_v11 }
  0x4c   : > { %370 = vperm.xlu1 %2291, %v2522_v26   ;;  %365 = vperm.xlu0 %2290, %v2525_v27  }
  0x4d   : > { %375 = vperm.xlu2 %2292, %v2530_v28  }
  0x52   : > { %2134 = vmatmul.msk.f32.gmra.mxu0 %vm418_vm0, %v221_v13  ;;  %2166 = vmatmul.msk.f32.gmra.mxu1 %vm418_vm0, %v221_v13 }
  0x53   : > { %2198 = vmatmul.msk.f32.gmra.mxu2 %vm418_vm0, %v221_v13  ;;  %2230 = vmatmul.msk.f32.gmra.mxu3 %vm418_vm0, %v221_v13 }
  0x54   : > { %395 = vperm.xlu1 %2291, %v2538_v29   ;;  %380 = vperm.xlu0 %2290, %v2541_v30  }
  0x55   : > { %390 = vperm.xlu2 %2292, %v2546_v31  }
  0x5a   : > { %2135 = vmatmul.msk.f32.gmra.mxu0 %vm418_vm0, %v2461_v15  ;;  %2167 = vmatmul.msk.f32.gmra.mxu1 %vm418_vm0, %v2461_v15 }
  0x5b   : > { %2199 = vmatmul.msk.f32.gmra.mxu2 %vm418_vm0, %v2461_v15  ;;  %2231 = vmatmul.msk.f32.gmra.mxu3 %vm418_vm0, %v2461_v15 }
  0x5c   : > { %410 = vperm.xlu1 %2291, %v2554_v32   ;;  %385 = vperm.xlu0 %2290, %v2557_v33  }
  0x5d   : > { %400 = vperm.xlu2 %2292, %v2564_v34  }
  0x62   : > { %2136 = vmatmul.msk.f32.gmra.mxu0 %vm418_vm0, %v2458_v14  ;;  %2168 = vmatmul.msk.f32.gmra.mxu1 %vm418_vm0, %v2458_v14 }
  0x63   : > { %2200 = vmatmul.msk.f32.gmra.mxu2 %vm418_vm0, %v2458_v14  ;;  %2232 = vmatmul.msk.f32.gmra.mxu3 %vm418_vm0, %v2458_v14 }
  0x64   : > { %415 = vperm.xlu0 %2290, %v2574_v35  }
  0x65   : > { %405 = vperm.xlu2 %2292, %v2581_v36  }
  0x6a   : > { %2137 = vmatmul.msk.f32.gmra.mxu0 %vm418_vm0, %v2466_v16  ;;  %2169 = vmatmul.msk.f32.gmra.mxu1 %vm418_vm0, %v2466_v16 }
  0x6b   : > { %2201 = vmatmul.msk.f32.gmra.mxu2 %vm418_vm0, %v2466_v16  ;;  %2233 = vmatmul.msk.f32.gmra.mxu3 %vm418_vm0, %v2466_v16 }
  0x72   : > { %2138 = vmatmul.msk.f32.gmra.mxu0 %vm418_vm0, %v2477_v18  ;;  %2170 = vmatmul.msk.f32.gmra.mxu1 %vm418_vm0, %v2477_v18 }
  0x73   : > { %2202 = vmatmul.msk.f32.gmra.mxu2 %vm418_vm0, %v2477_v18  ;;  %2234 = vmatmul.msk.f32.gmra.mxu3 %vm418_vm0, %v2477_v18 }
  0x7a   : > { %2139 = vmatmul.msk.f32.gmra.mxu0 %vm418_vm0, %v2474_v17  ;;  %2171 = vmatmul.msk.f32.gmra.mxu1 %vm418_vm0, %v2474_v17 }
  0x7b   : > { %2203 = vmatmul.msk.f32.gmra.mxu2 %vm418_vm0, %v2474_v17  ;;  %2235 = vmatmul.msk.f32.gmra.mxu3 %vm418_vm0, %v2474_v17 }
  0x82   : > { %2140 = vmatmul.msk.f32.gmra.mxu0 %vm418_vm0, %v2482_v19  ;;  %2172 = vmatmul.msk.f32.gmra.mxu1 %vm418_vm0, %v2482_v19 }
  0x83   : > { %2204 = vmatmul.msk.f32.gmra.mxu2 %vm418_vm0, %v2482_v19  ;;  %2236 = vmatmul.msk.f32.gmra.mxu3 %vm418_vm0, %v2482_v19 }
  0x86   : > { %v261_v37 = vpop.permute.xlu0 %260  ;;  %v271_v56 = vpop.permute.xlu1 %270 }
  0x8a   : > { %2141 = vmatmul.msk.f32.gmra.mxu0 %vm418_vm0, %v2493_v21  ;;  %2173 = vmatmul.msk.f32.gmra.mxu1 %vm418_vm0, %v2493_v21 }
  0x8b   : > { %2205 = vmatmul.msk.f32.gmra.mxu2 %vm418_vm0, %v2493_v21  ;;  %2237 = vmatmul.msk.f32.gmra.mxu3 %vm418_vm0, %v2493_v21 }
  0x8e   : > { %v266_v43 = vpop.permute.xlu0 %265  ;;  %v276_v9 = vpop.permute.xlu1 %275 }
  0x8f   : > { %v500_v38 = vpop.f32.mrf.mxu0  ;;  %v613_v39 = vpop.f32.mrf.mxu1 }
  0x90   : > { %v501_v40 = vadd.f32 %v500_v38, %v261_v37  ;;  %v614_v41 = vadd.f32 %v613_v39, %v261_v37 }
  0x92   : > { %2142 = vmatmul.msk.f32.gmra.mxu0 %vm418_vm0, %v2490_v20  ;;  %2174 = vmatmul.msk.f32.gmra.mxu1 %vm418_vm0, %v2490_v20  ;;  %v935_v42 = vmin.f32 %v501_v40, %v614_v41 }
  0x93   : > { %2206 = vmatmul.msk.f32.gmra.mxu2 %vm418_vm0, %v2490_v20  ;;  %2238 = vmatmul.msk.f32.gmra.mxu3 %vm418_vm0, %v2490_v20 }
  0x96   : > { %v726_v44 = vpop.f32.mrf.mxu2  ;;  %v839_v45 = vpop.f32.mrf.mxu3 }
  0x97   : > { %v727_v46 = vadd.f32 %v726_v44, %v261_v37  ;;  %v840_v47 = vadd.f32 %v839_v45, %v261_v37  ;;  %v503_v48 = vpop.f32.mrf.mxu0  ;;  %v616_v49 = vpop.f32.mrf.mxu1 }
  0x98   : > { %v504_v50 = vadd.f32 %v503_v48, %v266_v43  ;;  %v617_v51 = vadd.f32 %v616_v49, %v266_v43  ;;  %v281_v37 = vpop.permute.xlu2 %280 }
  0x99   : > { %v967_v52 = vmin.f32 %v935_v42, %v727_v46 }
  0x9a   : > { %v1162_v53 = vmin.f32 %v501_v40, %v504_v50  ;;  %v1163_v54 = vmin.f32 %v614_v41, %v617_v51  ;;  %2143 = vmatmul.msk.f32.gmra.mxu0 %vm418_vm0, %v2498_v22  ;;  %2175 = vmatmul.msk.f32.gmra.mxu1 %vm418_vm0, %v2498_v22  ;;  %v936_v57 = vmin.f32 %v504_v50, %v617_v51 }
  0x9b   : > { %2207 = vmatmul.msk.f32.gmra.mxu2 %vm418_vm0, %v2498_v22  ;;  %2239 = vmatmul.msk.f32.gmra.mxu3 %vm418_vm0, %v2498_v22  ;;  %v999_v55 = vmin.f32 %v967_v52, %v840_v47 }
  0x9d   : > { %1346 = vmin.xlane.f32.xlu1 %v999_v55 }
  0x9e   : > { %v729_v58 = vpop.f32.mrf.mxu2  ;;  %v842_v59 = vpop.f32.mrf.mxu3 }
  0x9f   : > { %v730_v60 = vadd.f32 %v729_v58, %v266_v43  ;;  %v843_v61 = vadd.f32 %v842_v59, %v266_v43  ;;  %v506_v62 = vpop.f32.mrf.mxu0  ;;  %v619_v63 = vpop.f32.mrf.mxu1 }
  0xa0   : > { %v507_v0 = vadd.f32 %v506_v62, %v271_v56  ;;  %v620_v1 = vadd.f32 %v619_v63, %v271_v56 }
  0xa1   : > { %v1164_v2 = vmin.f32 %v727_v46, %v730_v60  ;;  %v1165_v3 = vmin.f32 %v840_v47, %v843_v61  ;;  %v968_v4 = vmin.f32 %v936_v57, %v730_v60 }
  0xa2   : > { %v1166_v5 = vmin.f32 %v1162_v53, %v507_v0  ;;  %v1167_v6 = vmin.f32 %v1163_v54, %v620_v1  ;;  %2144 = vmatmul.msk.f32.gmra.mxu0 %vm418_vm0, %v2509_v24  ;;  %2176 = vmatmul.msk.f32.gmra.mxu1 %vm418_vm0, %v2509_v24  ;;  %v937_v8 = vmin.f32 %v507_v0, %v620_v1  ;;  %v286_v53 = vpop.permute.xlu2 %285 }
  0xa3   : > { %2208 = vmatmul.msk.f32.gmra.mxu2 %vm418_vm0, %v2509_v24  ;;  %2240 = vmatmul.msk.f32.gmra.mxu3 %vm418_vm0, %v2509_v24  ;;  %v1000_v7 = vmin.f32 %v968_v4, %v843_v61  ;;  %v291_v4 = vpop.permute.xlu0 %290 }
  0xa5   : > { %1348 = vmin.xlane.f32.xlu2 %v1000_v7 }
  0xa6   : > { %v732_v10 = vpop.f32.mrf.mxu2  ;;  %v845_v11 = vpop.f32.mrf.mxu3 }
  0xa7   : > { %v733_v12 = vadd.f32 %v732_v10, %v271_v56  ;;  %v846_v13 = vadd.f32 %v845_v11, %v271_v56  ;;  %v509_v14 = vpop.f32.mrf.mxu0  ;;  %v622_v15 = vpop.f32.mrf.mxu1 }
  0xa8   : > { %v510_v16 = vadd.f32 %v509_v14, %v276_v9  ;;  %v623_v17 = vadd.f32 %v622_v15, %v276_v9 }
  0xa9   : > { %v1168_v18 = vmin.f32 %v1164_v2, %v733_v12  ;;  %v1169_v19 = vmin.f32 %v1165_v3, %v846_v13  ;;  %v969_v20 = vmin.f32 %v937_v8, %v733_v12 }
  0xaa   : > { %v1170_v21 = vmin.f32 %v1166_v5, %v510_v16  ;;  %v1171_v22 = vmin.f32 %v1167_v6, %v623_v17  ;;  %2145 = vmatmul.msk.f32.gmra.mxu0 %vm418_vm0, %v2506_v23  ;;  %2177 = vmatmul.msk.f32.gmra.mxu1 %vm418_vm0, %v2506_v23  ;;  %v938_v38 = vmin.f32 %v510_v16, %v623_v17 }
  0xab   : > { %2209 = vmatmul.msk.f32.gmra.mxu2 %vm418_vm0, %v2506_v23  ;;  %2241 = vmatmul.msk.f32.gmra.mxu3 %vm418_vm0, %v2506_v23  ;;  %v1001_v24 = vmin.f32 %v969_v20, %v846_v13 }
  0xad   : > { %1350 = vmin.xlane.f32.xlu0 %v1001_v24 }
  0xae   : > { %v735_v39 = vpop.f32.mrf.mxu2  ;;  %v848_v40 = vpop.f32.mrf.mxu3 }
  0xaf   : > { %v736_v41 = vadd.f32 %v735_v39, %v276_v9  ;;  %v849_v42 = vadd.f32 %v848_v40, %v276_v9  ;;  %v512_v43 = vpop.f32.mrf.mxu0  ;;  %v625_v44 = vpop.f32.mrf.mxu1 }
  0xb0   : > { %v513_v45 = vadd.f32 %v512_v43, %v281_v37  ;;  %v626_v46 = vadd.f32 %v625_v44, %v281_v37 }
  0xb1   : > { %v1172_v47 = vmin.f32 %v1168_v18, %v736_v41  ;;  %v1173_v48 = vmin.f32 %v1169_v19, %v849_v42  ;;  %v970_v49 = vmin.f32 %v938_v38, %v736_v41  ;;  %v296_v19 = vpop.permute.xlu1 %295 }
  0xb2   : > { %v1174_v50 = vmin.f32 %v1170_v21, %v513_v45  ;;  %v1175_v51 = vmin.f32 %v1171_v22, %v626_v46  ;;  %2146 = vmatmul.msk.f32.gmra.mxu0 %vm418_vm0, %v2514_v25  ;;  %2178 = vmatmul.msk.f32.gmra.mxu1 %vm418_vm0, %v2514_v25  ;;  %v939_v52 = vmin.f32 %v513_v45, %v626_v46 }
  0xb3   : > { %2210 = vmatmul.msk.f32.gmra.mxu2 %vm418_vm0, %v2514_v25  ;;  %2242 = vmatmul.msk.f32.gmra.mxu3 %vm418_vm0, %v2514_v25  ;;  %v1002_v23 = vmin.f32 %v970_v49, %v849_v42 }
  0xb5   : > { %1352 = vmin.xlane.f32.xlu1 %v1002_v23 }
  0xb6   : > { %v738_v54 = vpop.f32.mrf.mxu2  ;;  %v851_v55 = vpop.f32.mrf.mxu3 }
  0xb7   : > { %v739_v56 = vadd.f32 %v738_v54, %v281_v37  ;;  %v852_v57 = vadd.f32 %v851_v55, %v281_v37  ;;  %v515_v58 = vpop.f32.mrf.mxu0  ;;  %v628_v59 = vpop.f32.mrf.mxu1 }
  0xb8   : > { %v516_v60 = vadd.f32 %v515_v58, %v286_v53  ;;  %v629_v61 = vadd.f32 %v628_v59, %v286_v53 }
  0xb9   : > { %v1176_v62 = vmin.f32 %v1172_v47, %v739_v56  ;;  %v1177_v63 = vmin.f32 %v1173_v48, %v852_v57  ;;  %v971_v0 = vmin.f32 %v939_v52, %v739_v56  ;;  %v301_v47 = vpop.permute.xlu2 %300 }
  0xba   : > { %v1178_v1 = vmin.f32 %v1174_v50, %v516_v60  ;;  %v1179_v2 = vmin.f32 %v1175_v51, %v629_v61  ;;  %2147 = vmatmul.msk.f32.gmra.mxu0 %vm418_vm0, %v2525_v27  ;;  %2179 = vmatmul.msk.f32.gmra.mxu1 %vm418_vm0, %v2525_v27  ;;  %v940_v3 = vmin.f32 %v516_v60, %v629_v61  ;;  %v306_v61 = vpop.permute.xlu0 %305 }
  0xbb   : > { %2211 = vmatmul.msk.f32.gmra.mxu2 %vm418_vm0, %v2525_v27  ;;  %2243 = vmatmul.msk.f32.gmra.mxu3 %vm418_vm0, %v2525_v27  ;;  %v1003_v25 = vmin.f32 %v971_v0, %v852_v57 }
  0xbd   : > { %1354 = vmin.xlane.f32.xlu0 %v1003_v25 }
  0xbe   : > { %v741_v5 = vpop.f32.mrf.mxu2  ;;  %v854_v6 = vpop.f32.mrf.mxu3 }
  0xbf   : > { %v742_v7 = vadd.f32 %v741_v5, %v286_v53  ;;  %v855_v8 = vadd.f32 %v854_v6, %v286_v53  ;;  %v518_v9 = vpop.f32.mrf.mxu0  ;;  %v631_v10 = vpop.f32.mrf.mxu1 }
  0xc0   : > { %v519_v11 = vadd.f32 %v518_v9, %v291_v4  ;;  %v632_v12 = vadd.f32 %v631_v10, %v291_v4  ;;  %v311_v10 = vpop.permute.xlu1 %310 }
  0xc1   : > { %v1180_v13 = vmin.f32 %v1176_v62, %v742_v7  ;;  %v1181_v14 = vmin.f32 %v1177_v63, %v855_v8  ;;  %v972_v15 = vmin.f32 %v940_v3, %v742_v7 }
  0xc2   : > { %v1182_v16 = vmin.f32 %v1178_v1, %v519_v11  ;;  %v1183_v17 = vmin.f32 %v1179_v2, %v632_v12  ;;  %2148 = vmatmul.msk.f32.gmra.mxu0 %vm418_vm0, %v2522_v26  ;;  %2180 = vmatmul.msk.f32.gmra.mxu1 %vm418_vm0, %v2522_v26  ;;  %v941_v18 = vmin.f32 %v519_v11, %v632_v12 }
  0xc3   : > { %2212 = vmatmul.msk.f32.gmra.mxu2 %vm418_vm0, %v2522_v26  ;;  %2244 = vmatmul.msk.f32.gmra.mxu3 %vm418_vm0, %v2522_v26  ;;  %v1004_v27 = vmin.f32 %v972_v15, %v855_v8 }
  0xc5   : > { %1356 = vmin.xlane.f32.xlu0 %v1004_v27 }
  0xc6   : > { %v744_v20 = vpop.f32.mrf.mxu2  ;;  %v857_v21 = vpop.f32.mrf.mxu3 }
  0xc7   : > { %v745_v22 = vadd.f32 %v744_v20, %v291_v4  ;;  %v858_v24 = vadd.f32 %v857_v21, %v291_v4  ;;  %v521_v37 = vpop.f32.mrf.mxu0  ;;  %v634_v38 = vpop.f32.mrf.mxu1 }
  0xc8   : > { %v522_v39 = vadd.f32 %v521_v37, %v296_v19  ;;  %v635_v40 = vadd.f32 %v634_v38, %v296_v19  ;;  %v316_v37 = vpop.permute.xlu2 %315 }
  0xc9   : > { %v1184_v41 = vmin.f32 %v1180_v13, %v745_v22  ;;  %v1185_v42 = vmin.f32 %v1181_v14, %v858_v24  ;;  %v973_v43 = vmin.f32 %v941_v18, %v745_v22 }
  0xca   : > { %v1186_v44 = vmin.f32 %v1182_v16, %v522_v39  ;;  %v1187_v45 = vmin.f32 %v1183_v17, %v635_v40  ;;  %2149 = vmatmul.msk.f32.gmra.mxu0 %vm418_vm0, %v2530_v28  ;;  %2181 = vmatmul.msk.f32.gmra.mxu1 %vm418_vm0, %v2530_v28  ;;  %v942_v46 = vmin.f32 %v522_v39, %v635_v40 }
  0xcb   : > { %2213 = vmatmul.msk.f32.gmra.mxu2 %vm418_vm0, %v2530_v28  ;;  %2245 = vmatmul.msk.f32.gmra.mxu3 %vm418_vm0, %v2530_v28  ;;  %v1005_v26 = vmin.f32 %v973_v43, %v858_v24 }
  0xcd   : > { %1358 = vmin.xlane.f32.xlu0 %v1005_v26 }
  0xce   : > { %v747_v48 = vpop.f32.mrf.mxu2  ;;  %v860_v49 = vpop.f32.mrf.mxu3 }
  0xcf   : > { %v748_v50 = vadd.f32 %v747_v48, %v296_v19  ;;  %v861_v51 = vadd.f32 %v860_v49, %v296_v19  ;;  %v524_v23 = vpop.f32.mrf.mxu0  ;;  %v637_v52 = vpop.f32.mrf.mxu1 }
  0xd0   : > { %v525_v53 = vadd.f32 %v524_v23, %v301_v47  ;;  %v638_v54 = vadd.f32 %v637_v52, %v301_v47 }
  0xd1   : > { %v1188_v55 = vmin.f32 %v1184_v41, %v748_v50  ;;  %v1189_v56 = vmin.f32 %v1185_v42, %v861_v51  ;;  %v974_v57 = vmin.f32 %v942_v46, %v748_v50 }
  0xd2   : > { %v1190_v58 = vmin.f32 %v1186_v44, %v525_v53  ;;  %v1191_v59 = vmin.f32 %v1187_v45, %v638_v54  ;;  %2150 = vmatmul.msk.f32.gmra.mxu0 %vm418_vm0, %v2541_v30  ;;  %2182 = vmatmul.msk.f32.gmra.mxu1 %vm418_vm0, %v2541_v30  ;;  %v943_v60 = vmin.f32 %v525_v53, %v638_v54 }
  0xd3   : > { %2214 = vmatmul.msk.f32.gmra.mxu2 %vm418_vm0, %v2541_v30  ;;  %2246 = vmatmul.msk.f32.gmra.mxu3 %vm418_vm0, %v2541_v30  ;;  %v1006_v28 = vmin.f32 %v974_v57, %v861_v51  ;;  %v321_v51 = vpop.permute.xlu0 %320 }
  0xd5   : > { %1360 = vmin.xlane.f32.xlu2 %v1006_v28 }
  0xd6   : > { %v750_v62 = vpop.f32.mrf.mxu2  ;;  %v863_v63 = vpop.f32.mrf.mxu3 }
  0xd7   : > { %v751_v0 = vadd.f32 %v750_v62, %v301_v47  ;;  %v864_v1 = vadd.f32 %v863_v63, %v301_v47  ;;  %v527_v2 = vpop.f32.mrf.mxu0  ;;  %v640_v25 = vpop.f32.mrf.mxu1 }
  0xd8   : > { %v528_v3 = vadd.f32 %v527_v2, %v306_v61  ;;  %v641_v4 = vadd.f32 %v640_v25, %v306_v61 }
  0xd9   : > { %v975_v5 = vmin.f32 %v943_v60, %v751_v0  ;;  %v1192_v6 = vmin.f32 %v1188_v55, %v751_v0  ;;  %v1193_v7 = vmin.f32 %v1189_v56, %v864_v1  ;;  %v326_v0 = vpop.permute.xlu1 %325 }
  0xda   : > { %v1194_v8 = vmin.f32 %v1190_v58, %v528_v3  ;;  %v1195_v9 = vmin.f32 %v1191_v59, %v641_v4  ;;  %2151 = vmatmul.msk.f32.gmra.mxu0 %vm418_vm0, %v2557_v33  ;;  %2183 = vmatmul.msk.f32.gmra.mxu1 %vm418_vm0, %v2557_v33  ;;  %v944_v11 = vmin.f32 %v528_v3, %v641_v4 }
  0xdb   : > { %2215 = vmatmul.msk.f32.gmra.mxu2 %vm418_vm0, %v2557_v33  ;;  %2247 = vmatmul.msk.f32.gmra.mxu3 %vm418_vm0, %v2557_v33  ;;  %v1007_v30 = vmin.f32 %v975_v5, %v864_v1 }
  0xdd   : > { %1362 = vmin.xlane.f32.xlu1 %v1007_v30 }
  0xde   : > { %v753_v12 = vpop.f32.mrf.mxu2  ;;  %v866_v13 = vpop.f32.mrf.mxu3 }
  0xdf   : > { %v754_v14 = vadd.f32 %v753_v12, %v306_v61  ;;  %v867_v15 = vadd.f32 %v866_v13, %v306_v61  ;;  %v530_v16 = vpop.f32.mrf.mxu0  ;;  %v643_v17 = vpop.f32.mrf.mxu1 }
  0xe0   : > { %v531_v27 = vadd.f32 %v530_v16, %v311_v10  ;;  %v644_v18 = vadd.f32 %v643_v17, %v311_v10  ;;  %v331_v13 = vpop.permute.xlu2 %330 }
  0xe1   : > { %v976_v19 = vmin.f32 %v944_v11, %v754_v14  ;;  %v1196_v20 = vmin.f32 %v1192_v6, %v754_v14  ;;  %v1197_v21 = vmin.f32 %v1193_v7, %v867_v15 }
  0xe2   : > { %v1198_v22 = vmin.f32 %v1194_v8, %v531_v27  ;;  %v1199_v24 = vmin.f32 %v1195_v9, %v644_v18  ;;  %2152 = vmatmul.msk.f32.gmra.mxu0 %vm418_vm0, %v2546_v31  ;;  %2184 = vmatmul.msk.f32.gmra.mxu1 %vm418_vm0, %v2546_v31  ;;  %v945_v38 = vmin.f32 %v531_v27, %v644_v18 }
  0xe3   : > { %2216 = vmatmul.msk.f32.gmra.mxu2 %vm418_vm0, %v2546_v31  ;;  %2248 = vmatmul.msk.f32.gmra.mxu3 %vm418_vm0, %v2546_v31  ;;  %v1008_v33 = vmin.f32 %v976_v19, %v867_v15 }
  0xe5   : > { %1364 = vmin.xlane.f32.xlu0 %v1008_v33 }
  0xe6   : > { %v756_v39 = vpop.f32.mrf.mxu2  ;;  %v869_v40 = vpop.f32.mrf.mxu3 }
  0xe7   : > { %v757_v41 = vadd.f32 %v756_v39, %v311_v10  ;;  %v870_v42 = vadd.f32 %v869_v40, %v311_v10  ;;  %v533_v43 = vpop.f32.mrf.mxu0  ;;  %v646_v44 = vpop.f32.mrf.mxu1 }
  0xe8   : > { %v534_v45 = vadd.f32 %v533_v43, %v316_v37  ;;  %v647_v26 = vadd.f32 %v646_v44, %v316_v37  ;;  %v336_v39 = vpop.permute.xlu0 %335 }
  0xe9   : > { %v977_v46 = vmin.f32 %v945_v38, %v757_v41  ;;  %v1200_v47 = vmin.f32 %v1196_v20, %v757_v41  ;;  %v1201_v48 = vmin.f32 %v1197_v21, %v870_v42 }
  0xea   : > { %v1202_v49 = vmin.f32 %v1198_v22, %v534_v45  ;;  %v1203_v50 = vmin.f32 %v1199_v24, %v647_v26  ;;  %2153 = vmatmul.msk.f32.gmra.mxu0 %vm418_vm0, %v2538_v29  ;;  %2185 = vmatmul.msk.f32.gmra.mxu1 %vm418_vm0, %v2538_v29  ;;  %v946_v23 = vmin.f32 %v534_v45, %v647_v26 }
  0xeb   : > { %2217 = vmatmul.msk.f32.gmra.mxu2 %vm418_vm0, %v2538_v29  ;;  %2249 = vmatmul.msk.f32.gmra.mxu3 %vm418_vm0, %v2538_v29  ;;  %v1009_v31 = vmin.f32 %v977_v46, %v870_v42 }
  0xed   : > { %1366 = vmin.xlane.f32.xlu2 %v1009_v31 }
  0xee   : > { %v759_v52 = vpop.f32.mrf.mxu2  ;;  %v872_v53 = vpop.f32.mrf.mxu3 }
  0xef   : > { %v760_v54 = vadd.f32 %v759_v52, %v316_v37  ;;  %v873_v55 = vadd.f32 %v872_v53, %v316_v37  ;;  %v536_v56 = vpop.f32.mrf.mxu0  ;;  %v649_v57 = vpop.f32.mrf.mxu1 }
  0xf0   : > { %v537_v58 = vadd.f32 %v536_v56, %v321_v51  ;;  %v650_v59 = vadd.f32 %v649_v57, %v321_v51 }
  0xf1   : > { %v978_v28 = vmin.f32 %v946_v23, %v760_v54  ;;  %v1204_v60 = vmin.f32 %v1200_v47, %v760_v54  ;;  %v1205_v61 = vmin.f32 %v1201_v48, %v873_v55  ;;  %v341_v23 = vpop.permute.xlu1 %340 }
  0xf2   : > { %v1206_v62 = vmin.f32 %v1202_v49, %v537_v58  ;;  %v1207_v63 = vmin.f32 %v1203_v50, %v650_v59  ;;  %2154 = vmatmul.msk.f32.gmra.mxu0 %vm418_vm0, %v2564_v34  ;;  %2186 = vmatmul.msk.f32.gmra.mxu1 %vm418_vm0, %v2564_v34  ;;  %v947_v1 = vmin.f32 %v537_v58, %v650_v59 }
  0xf3   : > { %2218 = vmatmul.msk.f32.gmra.mxu2 %vm418_vm0, %v2564_v34  ;;  %2250 = vmatmul.msk.f32.gmra.mxu3 %vm418_vm0, %v2564_v34  ;;  %v1010_v29 = vmin.f32 %v978_v28, %v873_v55 }
  0xf5   : > { %1368 = vmin.xlane.f32.xlu1 %v1010_v29 }
  0xf6   : > { %v762_v2 = vpop.f32.mrf.mxu2  ;;  %v875_v25 = vpop.f32.mrf.mxu3 }
  0xf7   : > { %v763_v3 = vadd.f32 %v762_v2, %v321_v51  ;;  %v876_v4 = vadd.f32 %v875_v25, %v321_v51  ;;  %v539_v5 = vpop.f32.mrf.mxu0  ;;  %v652_v6 = vpop.f32.mrf.mxu1 }
  0xf8   : > { %v540_v7 = vadd.f32 %v539_v5, %v326_v0  ;;  %v653_v8 = vadd.f32 %v652_v6, %v326_v0 }
  0xf9   : > { %v979_v9 = vmin.f32 %v947_v1, %v763_v3  ;;  %v1208_v30 = vmin.f32 %v1204_v60, %v763_v3  ;;  %v1209_v10 = vmin.f32 %v1205_v61, %v876_v4  ;;  %v346_v1 = vpop.permute.xlu2 %345 }
  0xfa   : > { %v1210_v11 = vmin.f32 %v1206_v62, %v540_v7  ;;  %v1211_v12 = vmin.f32 %v1207_v63, %v653_v8  ;;  %2155 = vmatmul.msk.f32.gmra.mxu0 %vm418_vm0, %v2581_v36  ;;  %2187 = vmatmul.msk.f32.gmra.mxu1 %vm418_vm0, %v2581_v36  ;;  %v948_v14 = vmin.f32 %v540_v7, %v653_v8 }
  0xfb   : > { %2219 = vmatmul.msk.f32.gmra.mxu2 %vm418_vm0, %v2581_v36  ;;  %2251 = vmatmul.msk.f32.gmra.mxu3 %vm418_vm0, %v2581_v36  ;;  %v1011_v34 = vmin.f32 %v979_v9, %v876_v4 }
  0xfd   : > { %1370 = vmin.xlane.f32.xlu2 %v1011_v34 }
  0xfe   : > { %v765_v15 = vpop.f32.mrf.mxu2  ;;  %v878_v16 = vpop.f32.mrf.mxu3 }
  0xff   : > { %v766_v17 = vadd.f32 %v765_v15, %v326_v0  ;;  %v879_v27 = vadd.f32 %v878_v16, %v326_v0  ;;  %v542_v18 = vpop.f32.mrf.mxu0  ;;  %v655_v19 = vpop.f32.mrf.mxu1 }
 0x100   : > { %v543_v20 = vadd.f32 %v542_v18, %v331_v13  ;;  %v656_v21 = vadd.f32 %v655_v19, %v331_v13 }
 0x101   : > { %v980_v22 = vmin.f32 %v948_v14, %v766_v17  ;;  %v1212_v24 = vmin.f32 %v1208_v30, %v766_v17  ;;  %v1213_v33 = vmin.f32 %v1209_v10, %v879_v27 }
 0x102   : > { %v1214_v37 = vmin.f32 %v1210_v11, %v543_v20  ;;  %v1215_v38 = vmin.f32 %v1211_v12, %v656_v21  ;;  %2156 = vmatmul.msk.f32.gmra.mxu0 %vm418_vm0, %v2554_v32  ;;  %2188 = vmatmul.msk.f32.gmra.mxu1 %vm418_vm0, %v2554_v32  ;;  %v949_v40 = vmin.f32 %v543_v20, %v656_v21 }
 0x103   : > { %2220 = vmatmul.msk.f32.gmra.mxu2 %vm418_vm0, %v2554_v32  ;;  %2252 = vmatmul.msk.f32.gmra.mxu3 %vm418_vm0, %v2554_v32  ;;  %v1012_v36 = vmin.f32 %v980_v22, %v879_v27 }
 0x105   : > { %1372 = vmin.xlane.f32.xlu1 %v1012_v36 }
 0x106   : > { %v768_v41 = vpop.f32.mrf.mxu2  ;;  %v881_v42 = vpop.f32.mrf.mxu3 }
 0x107   : > { %v769_v43 = vadd.f32 %v768_v41, %v331_v13  ;;  %v882_v44 = vadd.f32 %v881_v42, %v331_v13  ;;  %v545_v45 = vpop.f32.mrf.mxu0  ;;  %v658_v26 = vpop.f32.mrf.mxu1 }
 0x108   : > { %v546_v46 = vadd.f32 %v545_v45, %v336_v39  ;;  %v659_v47 = vadd.f32 %v658_v26, %v336_v39  ;;  %v351_v13 = vpop.permute.xlu0 %350 }
 0x109   : > { %v981_v48 = vmin.f32 %v949_v40, %v769_v43  ;;  %v1216_v49 = vmin.f32 %v1212_v24, %v769_v43  ;;  %v1217_v50 = vmin.f32 %v1213_v33, %v882_v44 }
 0x10a   : > { %v1218_v31 = vmin.f32 %v1214_v37, %v546_v46  ;;  %v1219_v51 = vmin.f32 %v1215_v38, %v659_v47  ;;  %2157 = vmatmul.msk.f32.gmra.mxu0 %vm418_vm0, %v2574_v35  ;;  %2189 = vmatmul.msk.f32.gmra.mxu1 %vm418_vm0, %v2574_v35  ;;  %v950_v52 = vmin.f32 %v546_v46, %v659_v47 }
 0x10b   : > { %2221 = vmatmul.msk.f32.gmra.mxu2 %vm418_vm0, %v2574_v35  ;;  %2253 = vmatmul.msk.f32.gmra.mxu3 %vm418_vm0, %v2574_v35  ;;  %v1013_v32 = vmin.f32 %v981_v48, %v882_v44 }
 0x10d   : > { %1374 = vmin.xlane.f32.xlu2 %v1013_v32 }
 0x10e   : > { %v771_v53 = vpop.f32.mrf.mxu2  ;;  %v884_v54 = vpop.f32.mrf.mxu3 }
 0x10f   : > { %v772_v55 = vadd.f32 %v771_v53, %v336_v39  ;;  %v885_v56 = vadd.f32 %v884_v54, %v336_v39  ;;  %v548_v57 = vpop.f32.mrf.mxu0  ;;  %v661_v58 = vpop.f32.mrf.mxu1 }
 0x110   : > { %v549_v59 = vadd.f32 %v548_v57, %v341_v23  ;;  %v662_v28 = vadd.f32 %v661_v58, %v341_v23  ;;  %v356_v39 = vpop.permute.xlu1 %355 }
 0x111   : > { %v982_v60 = vmin.f32 %v950_v52, %v772_v55  ;;  %v1220_v61 = vmin.f32 %v1216_v49, %v772_v55  ;;  %v1221_v62 = vmin.f32 %v1217_v50, %v885_v56 }
 0x112   : > { %v1222_v63 = vmin.f32 %v1218_v31, %v549_v59  ;;  %v1223_v29 = vmin.f32 %v1219_v51, %v662_v28  ;;  %v951_v35 = vmin.f32 %v549_v59, %v662_v28 }
 0x113   : > { %v1014_v0 = vmin.f32 %v982_v60, %v885_v56 }
 0x115   : > { %1376 = vmin.xlane.f32.xlu1 %v1014_v0 }
 0x116   : > { %v774_v2 = vpop.f32.mrf.mxu2  ;;  %v887_v25 = vpop.f32.mrf.mxu3 }
 0x117   : > { %v775_v3 = vadd.f32 %v774_v2, %v341_v23  ;;  %v888_v4 = vadd.f32 %v887_v25, %v341_v23  ;;  %v551_v5 = vpop.f32.mrf.mxu0  ;;  %v664_v6 = vpop.f32.mrf.mxu1 }
 0x118   : > { %v552_v7 = vadd.f32 %v551_v5, %v346_v1  ;;  %v665_v8 = vadd.f32 %v664_v6, %v346_v1  ;;  %v361_v23 = vpop.permute.xlu2 %360 }
 0x119   : > { %v983_v9 = vmin.f32 %v951_v35, %v775_v3  ;;  %v1224_v30 = vmin.f32 %v1220_v61, %v775_v3  ;;  %v1225_v10 = vmin.f32 %v1221_v62, %v888_v4 }
 0x11a   : > { %v1226_v11 = vmin.f32 %v1222_v63, %v552_v7  ;;  %v1227_v12 = vmin.f32 %v1223_v29, %v665_v8  ;;  %v952_v14 = vmin.f32 %v552_v7, %v665_v8 }
 0x11b   : > { %v1015_v34 = vmin.f32 %v983_v9, %v888_v4 }
 0x11d   : > { %1378 = vmin.xlane.f32.xlu0 %v1015_v34 }
 0x11e   : > { %v777_v15 = vpop.f32.mrf.mxu2  ;;  %v890_v16 = vpop.f32.mrf.mxu3 }
 0x11f   : > { %v778_v17 = vadd.f32 %v777_v15, %v346_v1  ;;  %v891_v27 = vadd.f32 %v890_v16, %v346_v1  ;;  %v554_v18 = vpop.f32.mrf.mxu0  ;;  %v667_v19 = vpop.f32.mrf.mxu1 }
 0x120   : > { %v555_v20 = vadd.f32 %v554_v18, %v351_v13  ;;  %v668_v21 = vadd.f32 %v667_v19, %v351_v13  ;;  %v366_v1 = vpop.permute.xlu0 %365 }
 0x121   : > { %v984_v22 = vmin.f32 %v952_v14, %v778_v17  ;;  %v1228_v24 = vmin.f32 %v1224_v30, %v778_v17  ;;  %v1229_v33 = vmin.f32 %v1225_v10, %v891_v27 }
 0x122   : > { %v1230_v37 = vmin.f32 %v1226_v11, %v555_v20  ;;  %v1231_v38 = vmin.f32 %v1227_v12, %v668_v21  ;;  %v953_v40 = vmin.f32 %v555_v20, %v668_v21 }
 0x123   : > { %v1016_v36 = vmin.f32 %v984_v22, %v891_v27  ;;  %v371_v22 = vpop.permute.xlu1 %370 }
 0x125   : > { %1380 = vmin.xlane.f32.xlu2 %v1016_v36 }
 0x126   : > { %v780_v41 = vpop.f32.mrf.mxu2  ;;  %v893_v42 = vpop.f32.mrf.mxu3 }
 0x127   : > { %v781_v43 = vadd.f32 %v780_v41, %v351_v13  ;;  %v894_v44 = vadd.f32 %v893_v42, %v351_v13  ;;  %v557_v45 = vpop.f32.mrf.mxu0  ;;  %v670_v26 = vpop.f32.mrf.mxu1 }
 0x128   : > { %v558_v46 = vadd.f32 %v557_v45, %v356_v39  ;;  %v671_v47 = vadd.f32 %v670_v26, %v356_v39  ;;  %v376_v45 = vpop.permute.xlu2 %375 }
 0x129   : > { %v985_v48 = vmin.f32 %v953_v40, %v781_v43  ;;  %v1232_v49 = vmin.f32 %v1228_v24, %v781_v43  ;;  %v1233_v50 = vmin.f32 %v1229_v33, %v894_v44 }
 0x12a   : > { %v1234_v31 = vmin.f32 %v1230_v37, %v558_v46  ;;  %v1235_v51 = vmin.f32 %v1231_v38, %v671_v47  ;;  %v954_v52 = vmin.f32 %v558_v46, %v671_v47 }
 0x12b   : > { %v1017_v32 = vmin.f32 %v985_v48, %v894_v44 }
 0x12d   : > { %1382 = vmin.xlane.f32.xlu1 %v1017_v32 }
 0x12e   : > { %v783_v53 = vpop.f32.mrf.mxu2  ;;  %v896_v54 = vpop.f32.mrf.mxu3 }
 0x12f   : > { %v784_v55 = vadd.f32 %v783_v53, %v356_v39  ;;  %v897_v56 = vadd.f32 %v896_v54, %v356_v39  ;;  %v560_v57 = vpop.f32.mrf.mxu0  ;;  %v673_v58 = vpop.f32.mrf.mxu1 }
 0x130   : > { %v561_v59 = vadd.f32 %v560_v57, %v361_v23  ;;  %v674_v28 = vadd.f32 %v673_v58, %v361_v23 }
 0x131   : > { %v986_v60 = vmin.f32 %v954_v52, %v784_v55  ;;  %v1236_v61 = vmin.f32 %v1232_v49, %v784_v55  ;;  %v1237_v62 = vmin.f32 %v1233_v50, %v897_v56 }
 0x132   : > { %v2757_v63 = vmin.f32 %v1234_v31, %v561_v59  ;;  %v2759_v29 = vmin.f32 %v1235_v51, %v674_v28  ;;  %v955_v25 = vmin.f32 %v561_v59, %v674_v28 }
 0x133   : > { %v1018_v0 = vmin.f32 %v986_v60, %v897_v56 }
 0x135   : > { %1384 = vmin.xlane.f32.xlu0 %v1018_v0 }
 0x136   : > { %v786_v35 = vpop.f32.mrf.mxu2  ;;  %v899_v2 = vpop.f32.mrf.mxu3 }
 0x137   : > { %v787_v3 = vadd.f32 %v786_v35, %v361_v23  ;;  %v900_v4 = vadd.f32 %v899_v2, %v361_v23  ;;  %v563_v5 = vpop.f32.mrf.mxu0  ;;  %v676_v6 = vpop.f32.mrf.mxu1 }
 0x138   : > { %v2761_v7 = vadd.f32 %v563_v5, %v366_v1  ;;  %v2763_v8 = vadd.f32 %v676_v6, %v366_v1  ;;  %v381_v23 = vpop.permute.xlu0 %380 }
 0x139   : > { %v987_v9 = vmin.f32 %v955_v25, %v787_v3  ;;  %v2765_v30 = vmin.f32 %v1236_v61, %v787_v3  ;;  %v2767_v10 = vmin.f32 %v1237_v62, %v900_v4  ;;  %v391_v3 = vpop.permute.xlu2 %390 }
 0x13a   : > { %v1242_v11 = vmin.f32 %v2757_v63, %v2761_v7  ;;  %v1243_v12 = vmin.f32 %v2759_v29, %v2763_v8  ;;  %v956_v15 = vmin.f32 %v2761_v7, %v2763_v8 }
 0x13b   : > { %v1019_v34 = vmin.f32 %v987_v9, %v900_v4 }
 0x13d   : > { %1386 = vmin.xlane.f32.xlu2 %v1019_v34 }
 0x13e   : > { %v789_v13 = vpop.f32.mrf.mxu2  ;;  %v902_v14 = vpop.f32.mrf.mxu3 }
 0x13f   : > { %v2775_v16 = vadd.f32 %v789_v13, %v366_v1  ;;  %v2777_v17 = vadd.f32 %v902_v14, %v366_v1  ;;  %v566_v27 = vpop.f32.mrf.mxu0  ;;  %v679_v18 = vpop.f32.mrf.mxu1 }
 0x140   : > { %v2784_v24 = vadd.f32 %v566_v27, %v371_v22  ;;  %v2786_v33 = vadd.f32 %v679_v18, %v371_v22  ;;  %v386_v1 = vpop.permute.xlu0 %385  ;;  %v396_v14 = vpop.permute.xlu1 %395 }
 0x141   : > { %v988_v19 = vmin.f32 %v956_v15, %v2775_v16  ;;  %v1244_v20 = vmin.f32 %v2765_v30, %v2775_v16  ;;  %v1245_v21 = vmin.f32 %v2767_v10, %v2777_v17 }
 0x142   : > { %v957_v39 = vmin.f32 %v2784_v24, %v2786_v33 }
 0x143   : > { %v1020_v37 = vmin.f32 %v988_v19, %v2777_v17 }
 0x145   : > { %1388 = vmin.xlane.f32.xlu1 %v1020_v37 }
 0x146   : > { %v792_v38 = vpop.f32.mrf.mxu2  ;;  %v905_v36 = vpop.f32.mrf.mxu3 }
 0x147   : > { %v2791_v40 = vadd.f32 %v792_v38, %v371_v22  ;;  %v569_v41 = vpop.f32.mrf.mxu0  ;;  %v682_v42 = vpop.f32.mrf.mxu1  ;;  %v2794_v44 = vadd.f32 %v905_v36, %v371_v22 }
 0x148   : > { %v2796_v26 = vadd.f32 %v569_v41, %v376_v45  ;;  %v2798_v46 = vadd.f32 %v682_v42, %v376_v45 }
 0x149   : > { %v989_v43 = vmin.f32 %v957_v39, %v2791_v40  ;;  %v1248_v8 = vmin.f32 %v1244_v20, %v2791_v40 }
 0x14a   : > { %v958_v50 = vmin.f32 %v2796_v26, %v2798_v46 }
 0x14b   : > { %v1021_v47 = vmin.f32 %v989_v43, %v2794_v44  ;;  %v401_v43 = vpop.permute.xlu2 %400 }
 0x14d   : > { %1390 = vmin.xlane.f32.xlu0 %v1021_v47 }
 0x14e   : > { %v795_v48 = vpop.f32.mrf.mxu2  ;;  %v908_v49 = vpop.f32.mrf.mxu3 }
 0x14f   : > { %v2803_v31 = vadd.f32 %v795_v48, %v376_v45  ;;  %v572_v51 = vpop.f32.mrf.mxu0  ;;  %v685_v32 = vpop.f32.mrf.mxu1  ;;  %v2806_v53 = vadd.f32 %v908_v49, %v376_v45 }
 0x150   : > { %v2808_v54 = vadd.f32 %v572_v51, %v381_v23  ;;  %v2810_v55 = vadd.f32 %v685_v32, %v381_v23  ;;  %v2844_v48 = vpop.permute.xlu1 %410 }
 0x151   : > { %v990_v52 = vmin.f32 %v958_v50, %v2803_v31 }
 0x152   : > { %v959_v59 = vmin.f32 %v2808_v54, %v2810_v55 }
 0x153   : > { %v1022_v56 = vmin.f32 %v990_v52, %v2806_v53 }
 0x155   : > { %1392 = vmin.xlane.f32.xlu2 %v1022_v56 }
 0x156   : > { %v798_v57 = vpop.f32.mrf.mxu2  ;;  %v911_v58 = vpop.f32.mrf.mxu3 }
 0x157   : > { %v2815_v28 = vadd.f32 %v798_v57, %v381_v23  ;;  %v575_v60 = vpop.f32.mrf.mxu0  ;;  %v688_v61 = vpop.f32.mrf.mxu1  ;;  %v2818_v0 = vadd.f32 %v911_v58, %v381_v23 }
 0x158   : > { %v2820_v35 = vadd.f32 %v575_v60, %v386_v1  ;;  %v2822_v2 = vadd.f32 %v688_v61, %v386_v1  ;;  %v406_v61 = vpop.permute.xlu2 %405 }
 0x159   : > { %v991_v62 = vmin.f32 %v959_v59, %v2815_v28 }
 0x15a   : > { %v960_v6 = vmin.f32 %v2820_v35, %v2822_v2 }
 0x15b   : > { %v1023_v25 = vmin.f32 %v991_v62, %v2818_v0  ;;  %v2858_v62 = vpop.permute.xlu0 %415 }
 0x15d   : > { %1394 = vmin.xlane.f32.xlu1 %v1023_v25 }
 0x15e   : > { %v801_v4 = vpop.f32.mrf.mxu2  ;;  %v914_v5 = vpop.f32.mrf.mxu3 }
 0x15f   : > { %v2827_v9 = vadd.f32 %v801_v4, %v386_v1  ;;  %v578_v34 = vpop.f32.mrf.mxu0  ;;  %v691_v13 = vpop.f32.mrf.mxu1  ;;  %v2830_v27 = vadd.f32 %v914_v5, %v386_v1 }
 0x160   : > { %v2832_v18 = vadd.f32 %v578_v34, %v391_v3  ;;  %v2834_v19 = vadd.f32 %v691_v13, %v391_v3  ;;  %v1347_v4 = vpop.xlane.xlu1 %1346 }
 0x161   : > { %v992_v15 = vmin.f32 %v960_v6, %v2827_v9 }
 0x162   : > { %v961_v36 = vmin.f32 %v2832_v18, %v2834_v19 }
 0x163   : > { %v1024_v22 = vmin.f32 %v992_v15, %v2830_v27 }
 0x165   : > { %1396 = vmin.xlane.f32.xlu0 %v1024_v22 }
 0x166   : > { %v804_v37 = vpop.f32.mrf.mxu2  ;;  %v917_v38 = vpop.f32.mrf.mxu3 }
 0x167   : > { %v2839_v39 = vadd.f32 %v804_v37, %v391_v3  ;;  %v581_v41 = vpop.f32.mrf.mxu0  ;;  %v694_v42 = vpop.f32.mrf.mxu1  ;;  %v2842_v47 = vadd.f32 %v917_v38, %v391_v3  ;;  %v2867_v37 = vmax.f32 %v1347_v4, 0.0  ;;  %v1247_v38 = vmin.f32 %v1243_v12, %v2786_v33 }
 0x168   : > { %v2846_v49 = vadd.f32 %v581_v41, %v396_v14  ;;  %v2848_v50 = vadd.f32 %v694_v42, %v396_v14 }
 0x169   : > { %v993_v45 = vmin.f32 %v961_v36, %v2839_v39  ;;  %2293 = vrsqrt.f32 %v2867_v37  ;;  %vm1449_vm1 = vcmp.eq.f32.partialorder %v2867_v37, inf  ;;  %vm1451_vm2 = vcmp.eq.f32.partialorder %v2867_v37, 0.0 }
 0x16a   : > { %v962_v52 = vmin.f32 %v2846_v49, %v2848_v50 }
 0x16b   : > { %v1025_v51 = vmin.f32 %v993_v45, %v2842_v47  ;;  %v1251_v45 = vmin.f32 %v1247_v38, %v2798_v46 }
 0x16d   : > { %1398 = vmin.xlane.f32.xlu2 %v1025_v51  ;;  %v1255_v29 = vmin.f32 %v1251_v45, %v2810_v55  ;;  %v1249_v55 = vmin.f32 %v1245_v21, %v2794_v44 }
 0x16e   : > { %v807_v32 = vpop.f32.mrf.mxu2  ;;  %v920_v23 = vpop.f32.mrf.mxu3 }
 0x16f   : > { %v2853_v56 = vadd.f32 %v807_v32, %v396_v14  ;;  %v584_v57 = vpop.f32.mrf.mxu0  ;;  %v697_v58 = vpop.f32.mrf.mxu1  ;;  %v2856_v60 = vadd.f32 %v920_v23, %v396_v14  ;;  %v1246_v14 = vmin.f32 %v1242_v11, %v2784_v24  ;;  %v1259_v46 = vmin.f32 %v1255_v29, %v2822_v2 }
 0x170   : > { %v585_v1 = vadd.f32 %v584_v57, %v401_v43  ;;  %v698_v25 = vadd.f32 %v697_v58, %v401_v43  ;;  %v1349_v11 = vpop.xlane.xlu2 %1348  ;;  %v1351_v24 = vpop.xlane.xlu0 %1350  ;;  %v1252_v57 = vmin.f32 %v1248_v8, %v2803_v31  ;;  %v1253_v2 = vmin.f32 %v1249_v55, %v2806_v53 }
 0x171   : > { %v994_v59 = vmin.f32 %v962_v52, %v2853_v56  ;;  %v1250_v42 = vmin.f32 %v1246_v14, %v2796_v26  ;;  %v2896_v16 = vmax.f32 %v1349_v11, 0.0  ;;  %v1263_v20 = vmin.f32 %v1259_v46, %v2834_v19  ;;  %v2905_v10 = vpop.eup %2293  ;;  %v1353_v53 = vpop.xlane.xlu1 %1352 }
 0x172   : > { %v963_v34 = vmin.f32 %v585_v1, %v698_v25  ;;  %v1256_v58 = vmin.f32 %v1252_v57, %v2815_v28 }
 0x173   : > { %v1026_v3 = vmin.f32 %v994_v59, %v2856_v60  ;;  %v1254_v7 = vmin.f32 %v1250_v42, %v2808_v54  ;;  %v1267_v17 = vmin.f32 %v1263_v20, %v2848_v50  ;;  %2295 = vrsqrt.f32 %v2896_v16 }
 0x174   : > { %v1260_v28 = vmin.f32 %v1256_v58, %v2827_v9  ;;  %v1443_v50 = vmul.f32 %v2905_v10, %v2867_v37  ;;  %vm1461_vm3 = vcmp.eq.f32.partialorder %v2896_v16, inf  ;;  %vm1463_vm4 = vcmp.eq.f32.partialorder %v2896_v16, 0.0 }
 0x175   : > { %1400 = vmin.xlane.f32.xlu1 %v1026_v3  ;;  %v1258_v12 = vmin.f32 %v1254_v7, %v2820_v35  ;;  %v2916_v3 = vmax.f32 %v1351_v24, 0.0 }
 0x176   : > { %v810_v5 = vpop.f32.mrf.mxu2  ;;  %v923_v6 = vpop.f32.mrf.mxu3 }
 0x177   : > { %v2861_v13 = vadd.f32 %v810_v5, %v401_v43  ;;  %v587_v15 = vpop.f32.mrf.mxu0  ;;  %v700_v22 = vpop.f32.mrf.mxu1  ;;  %v2874_v41 = vadd.f32 %v923_v6, %v401_v43  ;;  %v1262_v30 = vmin.f32 %v1258_v12, %v2832_v18  ;;  %v1257_v18 = vmin.f32 %v1253_v2, %v2818_v0 }
 0x178   : > { %v588_v51 = vadd.f32 %v587_v15, %v406_v61  ;;  %v701_v32 = vadd.f32 %v700_v22, %v406_v61  ;;  %v1264_v0 = vmin.f32 %v1260_v28, %v2839_v39  ;;  %2297 = vrsqrt.f32 %v2916_v3 }
 0x179   : > { %v995_v36 = vmin.f32 %v963_v34, %v2861_v13  ;;  %v1266_v59 = vmin.f32 %v1262_v30, %v2846_v49  ;;  %v1271_v49 = vmin.f32 %v1267_v17, %v698_v25  ;;  %v1261_v4 = vmin.f32 %v1257_v18, %v2830_v27  ;;  %v2930_v11 = vpop.eup %2295 }
 0x17a   : > { %v964_v43 = vmin.f32 %v588_v51, %v701_v32  ;;  %v1268_v27 = vmin.f32 %v1264_v0, %v2853_v56  ;;  %v2927_v39 = vmax.f32 %v1353_v53, 0.0  ;;  %v1444_v12 = vmul.f32 %v2905_v10, %v1443_v50 }
 0x17b   : > { %v1027_v63 = vmin.f32 %v995_v36, %v2874_v41  ;;  %v1270_v19 = vmin.f32 %v1266_v59, %v585_v1  ;;  %v1275_v1 = vmin.f32 %v1271_v49, %v701_v32  ;;  %v1265_v25 = vmin.f32 %v1261_v4, %v2842_v47 }
 0x17c   : > { %v1272_v47 = vmin.f32 %v1268_v27, %v2861_v13  ;;  %2299 = vrsqrt.f32 %v2927_v39  ;;  %v1445_v58 = vmul.f32 0.5, %v1444_v12  ;;  %vm1473_vm5 = vcmp.eq.f32.partialorder %v2916_v3, inf }
 0x17d   : > { %1402 = vmin.xlane.f32.xlu0 %v1027_v63  ;;  %v1274_v5 = vmin.f32 %v1270_v19, %v588_v51  ;;  %v1269_v32 = vmin.f32 %v1265_v25, %v2856_v60  ;;  %vm1475_vm10 = vcmp.eq.f32.partialorder %v2916_v3, 0.0  ;;  %vm1485_vm11 = vcmp.eq.f32.partialorder %v2927_v39, inf }
 0x17e   : > { %v813_v33 = vpop.f32.mrf.mxu2  ;;  %v926_v26 = vpop.f32.mrf.mxu3 }
 0x17f   : > { %v2888_v54 = vadd.f32 %v813_v33, %v406_v61  ;;  %v590_v23 = vpop.f32.mrf.mxu0  ;;  %v703_v52 = vpop.f32.mrf.mxu1  ;;  %v2900_v35 = vadd.f32 %v926_v26, %v406_v61  ;;  %v1273_v8 = vmin.f32 %v1269_v32, %v2874_v41  ;;  %v1455_v26 = vmul.f32 %v2930_v11, %v2896_v16 }
 0x180   : > { %v591_v21 = vadd.f32 %v590_v23, %v2844_v48  ;;  %v704_v44 = vadd.f32 %v703_v52, %v2844_v48  ;;  %v1355_v61 = vpop.xlane.xlu0 %1354  ;;  %v2942_v57 = vpop.eup %2297 }
 0x181   : > { %v996_v40 = vmin.f32 %v964_v43, %v2888_v54  ;;  %v1277_v60 = vmin.f32 %v1273_v8, %v2900_v35  ;;  %v1456_v59 = vmul.f32 %v2930_v11, %v1455_v26 }
 0x182   : > { %v965_v15 = vmin.f32 %v591_v21, %v704_v44  ;;  %v1278_v38 = vmin.f32 %v1274_v5, %v591_v21  ;;  %v1279_v45 = vmin.f32 %v1275_v1, %v704_v44  ;;  %v1467_v21 = vmul.f32 %v2942_v57, %v2916_v3  ;;  %v2947_v19 = vpop.eup %2299 }
 0x183   : > { %v1028_v31 = vmin.f32 %v996_v40, %v2900_v35  ;;  %v1446_v5 = vsub.f32 1.5, %v1445_v58  ;;  %v1457_v0 = vmul.f32 0.5, %v1456_v59 }
 0x184   : > { %v1468_v1 = vmul.f32 %v2942_v57, %v1467_v21 }
 0x185   : > { %1404 = vmin.xlane.f32.xlu2 %v1028_v31 }
 0x186   : > { %v816_v6 = vpop.f32.mrf.mxu2  ;;  %v929_v34 = vpop.f32.mrf.mxu3 }
 0x187   : > { %v817_v22 = vadd.f32 %v816_v6, %v2844_v48  ;;  %v593_v14 = vpop.f32.mrf.mxu0  ;;  %v706_v9 = vpop.f32.mrf.mxu1  ;;  %v930_v63 = vadd.f32 %v929_v34, %v2844_v48  ;;  %v1276_v48 = vmin.f32 %v1272_v47, %v2888_v54 }
 0x188   : > { %v594_v36 = vadd.f32 %v593_v14, %v2858_v62  ;;  %v707_v42 = vadd.f32 %v706_v9, %v2858_v62  ;;  %v1357_v54 = vpop.xlane.xlu0 %1356  ;;  %v1479_v14 = vmul.f32 %v2947_v19, %v2927_v39 }
 0x189   : > { %v997_v51 = vmin.f32 %v965_v15, %v817_v22  ;;  %v1280_v23 = vmin.f32 %v1276_v48, %v817_v22  ;;  %v1281_v30 = vmin.f32 %v1277_v60, %v930_v63 }
 0x18a   : > { %v1282_v7 = vmin.f32 %v1278_v38, %v594_v36  ;;  %v1283_v24 = vmin.f32 %v1279_v45, %v707_v42  ;;  %v966_v44 = vmin.f32 %v594_v36, %v707_v42  ;;  %v1447_v45 = vmul.f32 %v2905_v10, %v1446_v5 }
 0x18b   : > { %v1029_v29 = vmin.f32 %v997_v51, %v930_v63  ;;  %v1458_v51 = vsub.f32 1.5, %v1457_v0  ;;  %v1469_v63 = vmul.f32 0.5, %v1468_v1  ;;  %v1480_v32 = vmul.f32 %v2947_v19, %v1479_v14 }
 0x18c   : > { %v1911_v56 = vrot.slane %v1282_v7, 4  ;;  %v1917_v33 = vrot.slane %v1283_v24, 4  ;;  %v1448_v10 = vmul.f32 %v1447_v45, %v2867_v37 }
 0x18d   : > { %1406 = vmin.xlane.f32.xlu1 %v1029_v29  ;;  %v1459_v12 = vmul.f32 %v2930_v11, %v1458_v51  ;;  %v1470_v26 = vsub.f32 1.5, %v1469_v63  ;;  %v1481_v60 = vmul.f32 0.5, %v1480_v32 }
 0x18e   : > { %v1912_v46 = vmin.f32 %v1282_v7, %v1911_v56  ;;  %v819_v13 = vpop.f32.mrf.mxu2  ;;  %v932_v43 = vpop.f32.mrf.mxu3  ;;  %v1918_v52 = vmin.f32 %v1283_v24, %v1917_v33  ;;  %v2390_v56 = vmov 0.0  }
 0x18f   : > { %v820_v41 = vadd.f32 %v819_v13, %v2858_v62  ;;  %v933_v55 = vadd.f32 %v932_v43, %v2858_v62  ;;  %v2949_v62 = vmax.f32 %v1355_v61, 0.0  ;;  %v2955_v61 = vmax.f32 %v1357_v54, 0.0  ;;  %257 = vst [vmem:[#allocation5] sm:$0x1] %v2390_v56 }
 0x190   : > { %v1913_v20 = vrot.slane %v1912_v46, 2  ;;  %v1919_v40 = vrot.slane %v1918_v52, 2  ;;  %v1359_v27 = vpop.xlane.xlu0 %1358  ;;  %v1460_v54 = vmul.f32 %v1459_v12, %v2896_v16 }
 0x191   : > { %v1284_v2 = vmin.f32 %v1280_v23, %v820_v41  ;;  %v1285_v17 = vmin.f32 %v1281_v30, %v933_v55  ;;  %v998_v50 = vmin.f32 %v966_v44, %v820_v41  ;;  %2301 = vrsqrt.f32 %v2949_v62  ;;  %v1361_v30 = vpop.xlane.xlu2 %1360 }
 0x192   : > { %v1914_v35 = vmin.f32 %v1912_v46, %v1913_v20  ;;  %v1920_v31 = vmin.f32 %v1918_v52, %v1919_v40  ;;  %v2966_v47 = vmax.f32 %v1359_v27, 0.0  ;;  %v1471_v40 = vmul.f32 %v2942_v57, %v1470_v26 }
 0x193   : > { %v1923_v18 = vrot.slane %v1284_v2, 4  ;;  %v1929_v28 = vrot.slane %v1285_v17, 4  ;;  %v1030_v42 = vmin.f32 %v998_v50, %v933_v55  ;;  %v1450_v55 = vsel %vm1449_vm1, %v2867_v37, %v1448_v10  ;;  %v1363_v50 = vpop.xlane.xlu1 %1362 }
 0x194   : > { %v1915_v53 = vrot.slane %v1914_v35, 1  ;;  %v1921_v49 = vrot.slane %v1920_v31, 1  ;;  %vm1487_vm1 = vcmp.eq.f32.partialorder %v2927_v39, 0.0 }
 0x195   : > { %v1924_v4 = vmin.f32 %v1284_v2, %v1923_v18  ;;  %v1930_v34 = vmin.f32 %v1285_v17, %v1929_v28  ;;  %1408 = vmin.xlane.f32.xlu0 %v1030_v42  ;;  %v1482_v2 = vsub.f32 1.5, %v1481_v60  ;;  %v1464_v28 = vand.u32 2147483648, %v2896_v16 }
 0x196   : > { %v1916_v6 = vmin.f32 %v1914_v35, %v1915_v53  ;;  %v1922_v15 = vmin.f32 %v1920_v31, %v1921_v49  ;;  %v1452_v35 = vand.u32 2147483648, %v2867_v37  ;;  %v2995_v31 = vmax.f32 %v1361_v30, 0.0 }
 0x197   : > { %v1925_v22 = vrot.slane %v1924_v4, 2  ;;  %v1931_v36 = vrot.slane %v1930_v34, 2  ;;  %v2968_v29 = vpop.eup %2301  ;;  %v1476_v49 = vand.u32 2147483648, %v2916_v3  ;;  %v1483_v0 = vmul.f32 %v2947_v19, %v1482_v2 }
 0x198   : > { %v2957_v9 = vmax.f32 %v1916_v6, 0.0  ;;  %v2959_v25 = vmax.f32 %v1922_v15, 0.0  ;;  %v1491_v43 = vmul.f32 %v2968_v29, %v2949_v62  ;;  %v3002_v53 = vsel %vm1451_vm2, %v1452_v35, %v1450_v55  ;;  %v1365_v1 = vpop.xlane.xlu0 %1364 }
 0x199   : > { %v1926_v38 = vmin.f32 %v1924_v4, %v1925_v22  ;;  %v1932_v24 = vmin.f32 %v1930_v34, %v1931_v36  ;;  %v1462_v6 = vsel %vm1461_vm3, %v2896_v16, %v1460_v54  ;;  %v1472_v34 = vmul.f32 %v1471_v40, %v2916_v3  ;;  %v1367_v45 = vpop.xlane.xlu2 %1366 }
 0x19a   : > { %2303 = vrsqrt.f32 %v2957_v9  ;;  %v1492_v17 = vmul.f32 %v2968_v29, %v1491_v43  ;;  %v3016_v42 = vmax.f32 %v1363_v50, 0.0  ;;  %v3018_v27 = vmax.f32 %v1365_v1, 0.0 }
 0x19b   : > { %2305 = vrsqrt.f32 %v2959_v25  ;;  %v1927_v7 = vrot.slane %v1926_v38, 1  ;;  %v1933_v48 = vrot.slane %v1932_v24, 1  ;;  %vm1946_vm6 = vcmp.eq.f32.partialorder %v2957_v9, inf  ;;  %v1369_v43 = vpop.xlane.xlu1 %1368 }
 0x19c   : > { %2307 = vrsqrt.f32 %v2955_v61  ;;  %v1493_v37 = vmul.f32 0.5, %v1492_v17  ;;  %vm1948_vm7 = vcmp.eq.f32.partialorder %v2957_v9, 0.0  ;;  %vm1958_vm8 = vcmp.eq.f32.partialorder %v2959_v25, inf }
 0x19d   : > { %v1928_v8 = vmin.f32 %v1926_v38, %v1927_v7  ;;  %2309 = vrsqrt.f32 %v2966_v47  ;;  %v1934_v52 = vmin.f32 %v1932_v24, %v1933_v48  ;;  %v1949_v7 = vand.u32 2147483648, %v2957_v9 }
 0x19e   : > { %v1961_v10 = vand.u32 2147483648, %v2959_v25  ;;  %vm1960_vm12 = vcmp.eq.f32.partialorder %v2959_v25, 0.0  ;;  %v1488_v55 = vand.u32 2147483648, %v2927_v39  ;;  %v1465_v2 = vsel %vm1463_vm4, %v1464_v28, %v1462_v6 }
 0x19f   : > { %v2973_v46 = vmax.f32 %v1928_v8, 0.0  ;;  %v2988_v59 = vmax.f32 %v1934_v52, 0.0  ;;  %v1484_v35 = vmul.f32 %v1483_v0, %v2927_v39  ;;  %v3047_v17 = vmax.f32 %v1369_v43, 0.0 }
 0x1a0   : > { %v2304_v33 = vpop.eup %2303  ;;  %v1829_v0 = vsel %vm1827_vm9, %v1465_v2, 0.0  ;;  %vm1497_vm2 = vcmp.eq.f32.partialorder %v2949_v62, inf  ;;  %vm1499_vm3 = vcmp.eq.f32.partialorder %v2949_v62, 0.0  ;;  %vm1509_vm4 = vcmp.eq.f32.partialorder %v2955_v61, inf }
 0x1a1   : > { %v2306_v13 = vpop.eup %2305  ;;  %v1940_v23 = vmul.f32 %v2304_v33, %v2957_v9  ;;  %2311 = vrsqrt.f32 %v2973_v46  ;;  %vm1970_vm13 = vcmp.eq.f32.partialorder %v2973_v46, inf  ;;  %v1973_v28 = vand.u32 2147483648, %v2973_v46 }
 0x1a2   : > { %v2979_v41 = vpop.eup %2307  ;;  %v1952_v11 = vmul.f32 %v2306_v13, %v2959_v25  ;;  %2313 = vrsqrt.f32 %v2988_v59  ;;  %vm1972_vm14 = vcmp.eq.f32.partialorder %v2973_v46, 0.0  ;;  %vm1982_vm15 = vcmp.eq.f32.partialorder %v2988_v59, inf }
 0x1a3   : > { %v1941_v20 = vmul.f32 %v2304_v33, %v1940_v23  ;;  %v1503_v21 = vmul.f32 %v2979_v41, %v2955_v61  ;;  %v2998_v57 = vpop.eup %2309  ;;  %2315 = vrsqrt.f32 %v2995_v31  ;;  %vm1984_vm0 = vcmp.eq.f32.partialorder %v2988_v59, 0.0 }
 0x1a4   : > { %v1953_v58 = vmul.f32 %v2306_v13, %v1952_v11  ;;  %v1515_v36 = vmul.f32 %v2998_v57, %v2966_v47  ;;  %2317 = vrsqrt.f32 %v3016_v42 }
 0x1a5   : > { %v1942_v44 = vmul.f32 0.5, %v1941_v20  ;;  %v1504_v22 = vmul.f32 %v2979_v41, %v1503_v21  ;;  %2319 = vrsqrt.f32 %v3018_v27  ;;  %v3039_v20 = vmax.f32 %v1367_v45, 0.0  ;;  %v1373_v45 = vpop.xlane.xlu1 %1372 }
 0x1a6   : > { %v1954_v18 = vmul.f32 0.5, %v1953_v58  ;;  %v1516_v54 = vmul.f32 %v2998_v57, %v1515_v36  ;;  %v1474_v58 = vsel %vm1473_vm5, %v2916_v3, %v1472_v34  ;;  %vm1511_vm5 = vcmp.eq.f32.partialorder %v2955_v61, 0.0 }
 0x1a7   : > { %v1943_v4 = vsub.f32 1.5, %v1942_v44  ;;  %v2312_v5 = vpop.eup %2311  ;;  %2321 = vrsqrt.f32 %v3039_v20 }
 0x1a8   : > { %v1955_v15 = vsub.f32 1.5, %v1954_v18  ;;  %v1964_v38 = vmul.f32 %v2312_v5, %v2973_v46  ;;  %v2314_v32 = vpop.eup %2313  ;;  %v1371_v18 = vpop.xlane.xlu2 %1370  ;;  %2323 = vrsqrt.f32 %v3047_v17 }
 0x1a9   : > { %v1944_v14 = vmul.f32 %v2304_v33, %v1943_v4  ;;  %v1976_v48 = vmul.f32 %v2314_v32, %v2988_v59  ;;  %v1494_v33 = vsub.f32 1.5, %v1493_v37  ;;  %v3033_v11 = vpop.eup %2315  ;;  %v3062_v1 = vmax.f32 %v1371_v18, 0.0 }
 0x1aa   : > { %v1956_v19 = vmul.f32 %v2306_v13, %v1955_v15  ;;  %v1965_v63 = vmul.f32 %v2312_v5, %v1964_v38  ;;  %v1505_v13 = vmul.f32 0.5, %v1504_v22  ;;  %v1527_v16 = vmul.f32 %v3033_v11, %v2995_v31  ;;  %v3058_v34 = vpop.eup %2317 }
 0x1ab   : > { %v1945_v51 = vmul.f32 %v1944_v14, %v2957_v9  ;;  %v1495_v21 = vmul.f32 %v2968_v29, %v1494_v33  ;;  %v3064_v37 = vpop.eup %2319  ;;  %v1477_v22 = vsel %vm1475_vm10, %v1476_v49, %v1474_v58  ;;  %2325 = vrsqrt.f32 %v3062_v1 }
 0x1ac   : > { %v1957_v24 = vmul.f32 %v1956_v19, %v2959_v25  ;;  %v1966_v12 = vmul.f32 0.5, %v1965_v63  ;;  %v1506_v44 = vsub.f32 1.5, %v1505_v13  ;;  %v1528_v3 = vmul.f32 %v3033_v11, %v1527_v16 }
 0x1ad   : > { %v1947_v8 = vsel %vm1946_vm6, %v2957_v9, %v1945_v51  ;;  %v1977_v9 = vmul.f32 %v2314_v32, %v1976_v48  ;;  %v1496_v36 = vmul.f32 %v1495_v21, %v2949_v62  ;;  %v1985_v51 = vand.u32 2147483648, %v2988_v59 }
 0x1ae   : > { %v1950_v26 = vsel %vm1948_vm7, %v1949_v7, %v1947_v8  ;;  %v1959_v60 = vsel %vm1958_vm8, %v2959_v25, %v1957_v24  ;;  %v1967_v52 = vsub.f32 1.5, %v1966_v12  ;;  %v1507_v19 = vmul.f32 %v2979_v41, %v1506_v44  ;;  %v1990_v24 = vld [vmem:[#allocation5] sm:$0x1]  ;;  %v3086_v8 = vpop.eup %2321 }
 0x1af   : > { %v1962_v23 = vsel %vm1960_vm12, %v1961_v10, %v1959_v60  ;;  %v1978_v25 = vmul.f32 0.5, %v1977_v9  ;;  %v1551_v7 = vmul.f32 %v3064_v37, %v3018_v27  ;;  %v1828_v10 = vsel %vm1827_vm9, %v3002_v53, 0.0  ;;  %v3093_v48 = vpop.eup %2323 }
 0x1b0   : > { %v1987_v30 = vadd.f32 %v1962_v23, %v1950_v26  ;;  %v1968_v40 = vmul.f32 %v2312_v5, %v1967_v52  ;;  %v1517_v5 = vmul.f32 0.5, %v1516_v54  ;;  %v3091_v12 = vmax.f32 %v1373_v45, 0.0  ;;  %v1375_v13 = vpop.xlane.xlu2 %1374 }
 0x1b1   : > { %v1979_v4 = vsub.f32 1.5, %v1978_v25  ;;  %v1830_v33 = vadd.f32 %v1829_v0, %v1828_v10  ;;  %v1831_v26 = vsel %vm1827_vm9, %v1477_v22, 0.0  ;;  %v1498_v43 = vsel %vm1497_vm2, %v2949_v62, %v1496_v36 }
 0x1b2   : > { %v1969_v50 = vmul.f32 %v1968_v40, %v2973_v46  ;;  %v1518_v63 = vsub.f32 1.5, %v1517_v5  ;;  %v1508_v23 = vmul.f32 %v1507_v19, %v2955_v61  ;;  %v1552_v54 = vmul.f32 %v3064_v37, %v1551_v7 }
 0x1b3   : > { %v1980_v29 = vmul.f32 %v2314_v32, %v1979_v4  ;;  %v1539_v32 = vmul.f32 %v3058_v34, %v3016_v42  ;;  %v1575_v40 = vmul.f32 %v3093_v48, %v3047_v17  ;;  %2327 = vrsqrt.f32 %v3091_v12 }
 0x1b4   : > { %v1971_v6 = vsel %vm1970_vm13, %v2973_v46, %v1969_v50  ;;  %v1486_v46 = vsel %vm1485_vm11, %v2927_v39, %v1484_v35  ;;  %v1519_v53 = vmul.f32 %v2998_v57, %v1518_v63  ;;  %v1529_v39 = vmul.f32 0.5, %v1528_v3  ;;  %v3110_v57 = vpop.eup %2325  ;;  %v1377_v35 = vpop.xlane.xlu1 %1376 }
 0x1b5   : > { %v1974_v15 = vsel %vm1972_vm14, %v1973_v28, %v1971_v6  ;;  %v1981_v38 = vmul.f32 %v1980_v29, %v2988_v59  ;;  %v1489_v60 = vsel %vm1487_vm1, %v1488_v55, %v1486_v46  ;;  %v1540_v9 = vmul.f32 %v3058_v34, %v1539_v32 }
 0x1b6   : > { %v1988_v14 = vadd.f32 %v1987_v30, %v1974_v15  ;;  %v1563_v30 = vmul.f32 %v3086_v8, %v3039_v20  ;;  %v1500_v55 = vand.u32 2147483648, %v2949_v62  ;;  %v3108_v25 = vmax.f32 %v1375_v13, 0.0 }
 0x1b7   : > { %v1983_v49 = vsel %vm1982_vm15, %v2988_v59, %v1981_v38  ;;  %v1832_v2 = vadd.f32 %v1831_v26, %v1830_v33  ;;  %v1512_v58 = vand.u32 2147483648, %v2955_v61  ;;  %v1833_v21 = vsel %vm1827_vm9, %v1489_v60, 0.0  ;;  %v1379_v38 = vpop.xlane.xlu0 %1378 }
 0x1b8   : > { %v1986_v41 = vsel %vm1984_vm0, %v1985_v51, %v1983_v49  ;;  %v1501_v44 = vsel %vm1499_vm3, %v1500_v55, %v1498_v43  ;;  %v1510_v18 = vsel %vm1509_vm4, %v2955_v61, %v1508_v23  ;;  %v1520_v50 = vmul.f32 %v1519_v53, %v2966_v47  ;;  %v1381_v10 = vpop.xlane.xlu2 %1380 }
 0x1b9   : > { %v1989_v59 = vadd.f32 %v1988_v14, %v1986_v41  ;;  %v1530_v4 = vsub.f32 1.5, %v1529_v39  ;;  %v1541_v5 = vmul.f32 0.5, %v1540_v9  ;;  %v1553_v16 = vmul.f32 0.5, %v1552_v54  ;;  %v3127_v0 = vpop.eup %2327 }
 0x1ba   : > { %v1564_v28 = vmul.f32 %v3086_v8, %v1563_v30  ;;  %v1576_v6 = vmul.f32 %v3093_v48, %v1575_v40  ;;  %v1587_v62 = vmul.f32 %v3110_v57, %v3062_v1  ;;  %2329 = vrsqrt.f32 %v3108_v25 }
 0x1bb   : > { %v1991_v52 = vadd.f32 %v1990_v24, %v1989_v59  ;;  %v3123_v29 = vmax.f32 %v1377_v35, 0.0  ;;  %vm1521_vm6 = vcmp.eq.f32.partialorder %v2966_v47, inf  ;;  %vm1999_vm7 = vcmask 1040384  }
 0x1bc   : > { %v1834_v15 = vadd.f32 %v1833_v21, %v1832_v2  ;;  %v1835_v22 = vsel %vm1827_vm9, %v1501_v44, 0.0  ;;  %v1513_v46 = vsel %vm1511_vm5, %v1512_v58, %v1510_v18  ;;  %v1522_v14 = vsel %vm1521_vm6, %v2966_v47, %v1520_v50 }
 0x1bd   : > { %1992 = vst [vmem:[#allocation5] sm:$0x1] %v1991_v52  ;;  %v1531_v36 = vmul.f32 %v3033_v11, %v1530_v4  ;;  %v1542_v19 = vsub.f32 1.5, %v1541_v5  ;;  %v1554_v45 = vsub.f32 1.5, %v1553_v16  ;;  %v1565_v51 = vmul.f32 0.5, %v1564_v28  ;;  %v1383_v16 = vpop.xlane.xlu1 %1382 }
 0x1be   : > { %v1577_v3 = vmul.f32 0.5, %v1576_v6  ;;  %v1588_v61 = vmul.f32 %v3110_v57, %v1587_v62  ;;  %2331 = vrsqrt.f32 %v3123_v29  ;;  %v1524_v32 = vand.u32 2147483648, %v2966_v47 }
 0x1bf   : > { %v1599_v7 = vmul.f32 %v3127_v0, %v3091_v12  ;;  %v3137_v41 = vmax.f32 %v1379_v38, 0.0  ;;  %v1836_v11 = vadd.f32 %v1835_v22, %v1834_v15  ;;  %vm1523_vm8 = vcmp.eq.f32.partialorder %v2966_v47, 0.0 }
 0x1c0   : > { %v3139_v24 = vpop.eup %2329  ;;  %v1837_v59 = vsel %vm1827_vm9, %v1513_v46, 0.0  ;;  %v1525_v33 = vsel %vm1523_vm8, %v1524_v32, %v1522_v14  ;;  %v1532_v26 = vmul.f32 %v1531_v36, %v2995_v31  ;;  %v1543_v60 = vmul.f32 %v3058_v34, %v1542_v19 }
 0x1c1   : > { %v1555_v13 = vmul.f32 %v3064_v37, %v1554_v45  ;;  %v1566_v43 = vsub.f32 1.5, %v1565_v51  ;;  %v1578_v23 = vsub.f32 1.5, %v1577_v3  ;;  %v1589_v53 = vmul.f32 0.5, %v1588_v61  ;;  %v1385_v45 = vpop.xlane.xlu0 %1384  ;;  %v1387_v61 = vpop.xlane.xlu2 %1386 }
 0x1c2   : > { %v1600_v52 = vmul.f32 %v3127_v0, %v1599_v7  ;;  %v1611_v39 = vmul.f32 %v3139_v24, %v3108_v25  ;;  %2333 = vrsqrt.f32 %v3137_v41  ;;  %v3150_v47 = vmax.f32 %v1381_v10, 0.0 }
 0x1c3   : > { %vm1533_vm10 = vcmp.eq.f32.partialorder %v2995_v31, inf  ;;  %vm1535_vm11 = vcmp.eq.f32.partialorder %v2995_v31, 0.0  ;;  %v1536_v34 = vand.u32 2147483648, %v2995_v31  ;;  %v1838_v37 = vadd.f32 %v1837_v59, %v1836_v11 }
 0x1c4   : > { %v1998_v63 = vld [vmem:[#allocation5] sm:$0x1]  ;;  %v3152_v9 = vpop.eup %2331  ;;  %v1839_v54 = vsel %vm1827_vm9, %v1525_v33, 0.0  ;;  %v1534_v30 = vsel %vm1533_vm10, %v2995_v31, %v1532_v26  ;;  %v1544_v55 = vmul.f32 %v1543_v60, %v3016_v42  ;;  %v1556_v40 = vmul.f32 %v1555_v13, %v3018_v27 }
 0x1c5   : > { %v2000_v49 = vsel %vm1999_vm7, %v1998_v63, 0.0  ;;  %v1567_v2 = vmul.f32 %v3086_v8, %v1566_v43  ;;  %v1579_v58 = vmul.f32 %v3093_v48, %v1578_v23  ;;  %v1590_v35 = vsub.f32 1.5, %v1589_v53 }
 0x1c6   : > { %2001 = vadd.xlane.f32.xlu1 %v2000_v49  ;;  %v1601_v21 = vmul.f32 0.5, %v1600_v52  ;;  %v1612_v44 = vmul.f32 %v3139_v24, %v1611_v39  ;;  %v1623_v18 = vmul.f32 %v3152_v9, %v3123_v29  ;;  %2335 = vrsqrt.f32 %v3150_v47  ;;  %v1389_v52 = vpop.xlane.xlu1 %1388 }
 0x1c7   : > { %v1840_v50 = vadd.f32 %v1839_v54, %v1838_v37  ;;  %vm1545_vm12 = vcmp.eq.f32.partialorder %v3016_v42, inf  ;;  %vm1547_vm13 = vcmp.eq.f32.partialorder %v3016_v42, 0.0  ;;  %v1548_v4 = vand.u32 2147483648, %v3016_v42 }
 0x1c8   : > { %v3170_v5 = vpop.eup %2333  ;;  %v1537_v8 = vsel %vm1535_vm11, %v1536_v34, %v1534_v30  ;;  %vm1557_vm14 = vcmp.eq.f32.partialorder %v3018_v27, inf  ;;  %vm1559_vm15 = vcmp.eq.f32.partialorder %v3018_v27, 0.0  ;;  %v1560_v48 = vand.u32 2147483648, %v3018_v27 }
 0x1c9   : > { %v1546_v28 = vsel %vm1545_vm12, %v3016_v42, %v1544_v55  ;;  %v1568_v6 = vmul.f32 %v1567_v2, %v3039_v20  ;;  %v1580_v62 = vmul.f32 %v1579_v58, %v3047_v17  ;;  %v1591_v15 = vmul.f32 %v3110_v57, %v1590_v35 }
 0x1ca   : > { %v1558_v22 = vsel %vm1557_vm14, %v3018_v27, %v1556_v40  ;;  %v1602_v46 = vsub.f32 1.5, %v1601_v21  ;;  %v1613_v31 = vmul.f32 0.5, %v1612_v44  ;;  %v1624_v14 = vmul.f32 %v3152_v9, %v1623_v18  ;;  %v1391_v18 = vpop.xlane.xlu0 %1390 }
 0x1cb   : > { %v1841_v38 = vsel %vm1827_vm9, %v1537_v8, 0.0  ;;  %vm1569_vm0 = vcmp.eq.f32.partialorder %v3039_v20, inf  ;;  %v1635_v36 = vmul.f32 %v3170_v5, %v3137_v41  ;;  %v3187_v19 = vmax.f32 %v1383_v16, 0.0 }
 0x1cc   : > { %v3189_v51 = vpop.eup %2335  ;;  %v1549_v57 = vsel %vm1547_vm13, %v1548_v4, %v1546_v28  ;;  %v1572_v63 = vand.u32 2147483648, %v3039_v20  ;;  %vm1581_vm1 = vcmp.eq.f32.partialorder %v3047_v17, inf  ;;  %v1584_v3 = vand.u32 2147483648, %v3047_v17 }
 0x1cd   : > { %v1561_v49 = vsel %vm1559_vm15, %v1560_v48, %v1558_v22  ;;  %v1570_v32 = vsel %vm1569_vm0, %v3039_v20, %v1568_v6  ;;  %v1582_v7 = vsel %vm1581_vm1, %v3047_v17, %v1580_v62  ;;  %v1592_v11 = vmul.f32 %v1591_v15, %v3062_v1  ;;  %v1393_v22 = vpop.xlane.xlu2 %1392 }
 0x1ce   : > { %v1603_v10 = vmul.f32 %v3127_v0, %v1602_v46  ;;  %v1614_v42 = vsub.f32 1.5, %v1613_v31  ;;  %v1625_v59 = vmul.f32 0.5, %v1624_v14  ;;  %v3202_v33 = vmax.f32 %v1385_v45, 0.0 }
 0x1cf   : > { %v1636_v26 = vmul.f32 %v3170_v5, %v1635_v36  ;;  %v1647_v60 = vmul.f32 %v3189_v51, %v3150_v47  ;;  %2337 = vrsqrt.f32 %v3187_v19  ;;  %v3208_v27 = vmax.f32 %v1387_v61, 0.0 }
 0x1d0   : > { %v1842_v13 = vadd.f32 %v1841_v38, %v1840_v50  ;;  %v1843_v43 = vsel %vm1827_vm9, %v1549_v57, 0.0  ;;  %vm1571_vm2 = vcmp.eq.f32.partialorder %v3039_v20, 0.0  ;;  %vm1583_vm3 = vcmp.eq.f32.partialorder %v3047_v17, 0.0  ;;  %v1395_v61 = vpop.xlane.xlu1 %1394 }
 0x1d1   : > { %v1845_v0 = vsel %vm1827_vm9, %v1561_v49, 0.0  ;;  %v1573_v23 = vsel %vm1571_vm2, %v1572_v63, %v1570_v32  ;;  %v1585_v53 = vsel %vm1583_vm3, %v1584_v3, %v1582_v7  ;;  %vm1593_vm4 = vcmp.eq.f32.partialorder %v3062_v1, inf }
 0x1d2   : > { %v1594_v39 = vsel %vm1593_vm4, %v3062_v1, %v1592_v11  ;;  %v1604_v34 = vmul.f32 %v1603_v10, %v3091_v12  ;;  %v1615_v37 = vmul.f32 %v3139_v24, %v1614_v42  ;;  %2339 = vrsqrt.f32 %v3202_v33 }
 0x1d3   : > { %v1626_v54 = vsub.f32 1.5, %v1625_v59  ;;  %v1637_v30 = vmul.f32 0.5, %v1636_v26  ;;  %v1648_v20 = vmul.f32 %v3189_v51, %v1647_v60  ;;  %2341 = vrsqrt.f32 %v3208_v27 }
 0x1d4   : > { %v1844_v17 = vadd.f32 %v1843_v43, %v1842_v13  ;;  %v1596_v55 = vand.u32 2147483648, %v3062_v1  ;;  %v3222_v40 = vmax.f32 %v1389_v52, 0.0  ;;  %v1847_v58 = vsel %vm1827_vm9, %v1573_v23, 0.0 }
 0x1d5   : > { %v3224_v2 = vpop.eup %2337  ;;  %vm1595_vm5 = vcmp.eq.f32.partialorder %v3062_v1, 0.0  ;;  %vm1605_vm6 = vcmp.eq.f32.partialorder %v3091_v12, inf  ;;  %v1849_v35 = vsel %vm1827_vm9, %v1585_v53, 0.0  ;;  %v1616_v50 = vmul.f32 %v1615_v37, %v3108_v25 }
 0x1d6   : > { %v1846_v24 = vadd.f32 %v1845_v0, %v1844_v17  ;;  %v1597_v21 = vsel %vm1595_vm5, %v1596_v55, %v1594_v39  ;;  %v1606_v44 = vsel %vm1605_vm6, %v3091_v12, %v1604_v34  ;;  %v1627_v4 = vmul.f32 %v3152_v9, %v1626_v54 }
 0x1d7   : > { %v1638_v8 = vsub.f32 1.5, %v1637_v30  ;;  %v1649_v48 = vmul.f32 0.5, %v1648_v20  ;;  %v1608_v1 = vand.u32 2147483648, %v3091_v12  ;;  %v1659_v6 = vmul.f32 %v3224_v2, %v3187_v19 }
 0x1d8   : > { %v3233_v16 = vpop.eup %2339  ;;  %v1848_v28 = vadd.f32 %v1847_v58, %v1846_v24  ;;  %2343 = vrsqrt.f32 %v3222_v40  ;;  %vm1607_vm7 = vcmp.eq.f32.partialorder %v3091_v12, 0.0  ;;  %v3242_v15 = vmax.f32 %v1391_v18, 0.0  ;;  %v1397_v11 = vpop.xlane.xlu0 %1396 }
 0x1d9   : > { %v3239_v62 = vpop.eup %2341  ;;  %v1851_v46 = vsel %vm1827_vm9, %v1597_v21, 0.0  ;;  %v1609_v31 = vsel %vm1607_vm7, %v1608_v1, %v1606_v44  ;;  %vm1617_vm8 = vcmp.eq.f32.partialorder %v3108_v25, inf  ;;  %v1628_v38 = vmul.f32 %v1627_v4, %v3123_v29 }
 0x1da   : > { %v1850_v9 = vadd.f32 %v1849_v35, %v1848_v28  ;;  %v1618_v14 = vsel %vm1617_vm8, %v3108_v25, %v1616_v50  ;;  %v1639_v36 = vmul.f32 %v3170_v5, %v1638_v8  ;;  %v1650_v45 = vsub.f32 1.5, %v1649_v48 }
 0x1db   : > { %v1660_v57 = vmul.f32 %v3224_v2, %v1659_v6  ;;  %v1671_v12 = vmul.f32 %v3233_v16, %v3202_v33  ;;  %v1683_v63 = vmul.f32 %v3239_v62, %v3208_v27  ;;  %v3254_v3 = vmax.f32 %v1393_v22, 0.0 }
 0x1dc   : > { %v1620_v49 = vand.u32 2147483648, %v3108_v25  ;;  %2345 = vrsqrt.f32 %v3242_v15  ;;  %v1852_v7 = vadd.f32 %v1851_v46, %v1850_v9  ;;  %v1853_v5 = vsel %vm1827_vm9, %v1609_v31, 0.0 }
 0x1dd   : > { %vm1619_vm10 = vcmp.eq.f32.partialorder %v3108_v25, 0.0  ;;  %vm1629_vm11 = vcmp.eq.f32.partialorder %v3123_v29, inf  ;;  %v1640_v59 = vmul.f32 %v1639_v36, %v3137_v41  ;;  %v1651_v26 = vmul.f32 %v3189_v51, %v1650_v45 }
 0x1de   : > { %v3258_v32 = vpop.eup %2343  ;;  %v1621_v10 = vsel %vm1619_vm10, %v1620_v49, %v1618_v14  ;;  %v1630_v42 = vsel %vm1629_vm11, %v3123_v29, %v1628_v38  ;;  %v1661_v60 = vmul.f32 0.5, %v1660_v57  ;;  %v1672_v13 = vmul.f32 %v3233_v16, %v1671_v12 }
 0x1df   : > { %v1684_v43 = vmul.f32 %v3239_v62, %v1683_v63  ;;  %2347 = vrsqrt.f32 %v3254_v3  ;;  %v1632_v0 = vand.u32 2147483648, %v3123_v29  ;;  %v1695_v25 = vmul.f32 %v3258_v32, %v3222_v40 }
 0x1e0   : > { %v3272_v23 = vmax.f32 %v1395_v61, 0.0  ;;  %v1854_v53 = vadd.f32 %v1853_v5, %v1852_v7  ;;  %vm1631_vm12 = vcmp.eq.f32.partialorder %v3123_v29, 0.0  ;;  %vm1641_vm13 = vcmp.eq.f32.partialorder %v3137_v41, inf  ;;  %v1399_v51 = vpop.xlane.xlu2 %1398 }
 0x1e1   : > { %v1855_v39 = vsel %vm1827_vm9, %v1621_v10, 0.0  ;;  %v1633_v34 = vsel %vm1631_vm12, %v1632_v0, %v1630_v42  ;;  %v1642_v37 = vsel %vm1641_vm13, %v3137_v41, %v1640_v59  ;;  %v3280_v54 = vmax.f32 %v1397_v11, 0.0 }
 0x1e2   : > { %v3276_v52 = vpop.eup %2345  ;;  %v1652_v30 = vmul.f32 %v1651_v26, %v3150_v47  ;;  %v1662_v20 = vsub.f32 1.5, %v1661_v60  ;;  %v1673_v17 = vmul.f32 0.5, %v1672_v13  ;;  %v1685_v55 = vmul.f32 0.5, %v1684_v43 }
 0x1e3   : > { %v1644_v29 = vand.u32 2147483648, %v3137_v41  ;;  %v1696_v24 = vmul.f32 %v3258_v32, %v1695_v25  ;;  %2349 = vrsqrt.f32 %v3272_v23  ;;  %v3286_v35 = vmax.f32 %v1399_v51, 0.0 }
 0x1e4   : > { %v1856_v44 = vadd.f32 %v1855_v39, %v1854_v53  ;;  %vm1643_vm14 = vcmp.eq.f32.partialorder %v3137_v41, 0.0  ;;  %vm1653_vm15 = vcmp.eq.f32.partialorder %v3150_v47, inf  ;;  %v1707_v18 = vmul.f32 %v3276_v52, %v3242_v15 }
 0x1e5   : > { %v3288_v21 = vpop.eup %2347  ;;  %v1857_v4 = vsel %vm1827_vm9, %v1633_v34, 0.0  ;;  %v1645_v8 = vsel %vm1643_vm14, %v1644_v29, %v1642_v37  ;;  %2351 = vrsqrt.f32 %v3280_v54  ;;  %v1654_v28 = vsel %vm1653_vm15, %v3150_v47, %v1652_v30 }
 0x1e6   : > { %v1663_v1 = vmul.f32 %v3224_v2, %v1662_v20  ;;  %v1674_v6 = vsub.f32 1.5, %v1673_v17  ;;  %v1686_v22 = vsub.f32 1.5, %v1685_v55  ;;  %v1697_v41 = vmul.f32 0.5, %v1696_v24 }
 0x1e7   : > { %v1719_v9 = vmul.f32 %v3288_v21, %v3254_v3  ;;  %2353 = vrsqrt.f32 %v3286_v35  ;;  %v1656_v31 = vand.u32 2147483648, %v3150_v47  ;;  %v1708_v14 = vmul.f32 %v3276_v52, %v1707_v18 }
 0x1e8   : > { %v1401_v58 = vpop.xlane.xlu1 %1400  ;;  %v1858_v36 = vadd.f32 %v1857_v4, %v1856_v44  ;;  %vm1655_vm0 = vcmp.eq.f32.partialorder %v3150_v47, 0.0  ;;  %v1859_v2 = vsel %vm1827_vm9, %v1645_v8, 0.0  ;;  %v1664_v57 = vmul.f32 %v1663_v1, %v3187_v19 }
 0x1e9   : > { %v3296_v48 = vmax.f32 %v1401_v58, 0.0  ;;  %v3307_v38 = vpop.eup %2349  ;;  %v1657_v45 = vsel %vm1655_vm0, %v1656_v31, %v1654_v28  ;;  %v1675_v12 = vmul.f32 %v3233_v16, %v1674_v6  ;;  %v1687_v61 = vmul.f32 %v3239_v62, %v1686_v22 }
 0x1ea   : > { %v1698_v49 = vsub.f32 1.5, %v1697_v41  ;;  %v1720_v7 = vmul.f32 %v3288_v21, %v1719_v9  ;;  %vm1665_vm1 = vcmp.eq.f32.partialorder %v3187_v19, inf  ;;  %vm1667_vm2 = vcmp.eq.f32.partialorder %v3187_v19, 0.0 }
 0x1eb   : > { %2355 = vrsqrt.f32 %v3296_v48  ;;  %v3314_v63 = vpop.eup %2351  ;;  %v1709_v47 = vmul.f32 0.5, %v1708_v14  ;;  %v1731_v5 = vmul.f32 %v3307_v38, %v3272_v23  ;;  %v1860_v16 = vadd.f32 %v1859_v2, %v1858_v36 }
 0x1ec   : > { %v1668_v42 = vand.u32 2147483648, %v3187_v19  ;;  %vm1677_vm3 = vcmp.eq.f32.partialorder %v3202_v33, inf  ;;  %v1861_v59 = vsel %vm1827_vm9, %v1657_v45, 0.0  ;;  %v1666_v26 = vsel %vm1665_vm1, %v3187_v19, %v1664_v57 }
 0x1ed   : > { %v3323_v10 = vpop.eup %2353  ;;  %v1676_v60 = vmul.f32 %v1675_v12, %v3202_v33  ;;  %v1743_v13 = vmul.f32 %v3314_v63, %v3280_v54  ;;  %v1688_v0 = vmul.f32 %v1687_v61, %v3208_v27  ;;  %v1699_v25 = vmul.f32 %v3258_v32, %v1698_v49 }
 0x1ee   : > { %v1721_v53 = vmul.f32 0.5, %v1720_v7  ;;  %vm1679_vm4 = vcmp.eq.f32.partialorder %v3202_v33, 0.0  ;;  %v1710_v51 = vsub.f32 1.5, %v1709_v47  ;;  %v1732_v39 = vmul.f32 %v3307_v38, %v1731_v5 }
 0x1ef   : > { %v1755_v34 = vmul.f32 %v3323_v10, %v3286_v35  ;;  %v1680_v30 = vand.u32 2147483648, %v3202_v33  ;;  %vm1689_vm5 = vcmp.eq.f32.partialorder %v3208_v27, inf  ;;  %vm1691_vm6 = vcmp.eq.f32.partialorder %v3208_v27, 0.0 }
 0x1f0   : > { %v1403_v50 = vpop.xlane.xlu0 %1402  ;;  %v1692_v32 = vand.u32 2147483648, %v3208_v27  ;;  %v1862_v20 = vadd.f32 %v1861_v59, %v1860_v16  ;;  %v1669_v17 = vsel %vm1667_vm2, %v1668_v42, %v1666_v26  ;;  %v1744_v55 = vmul.f32 %v3314_v63, %v1743_v13 }
 0x1f1   : > { %v3303_v46 = vmax.f32 %v1403_v50, 0.0  ;;  %v3334_v43 = vpop.eup %2355  ;;  %v1678_v29 = vsel %vm1677_vm3, %v3202_v33, %v1676_v60  ;;  %v1690_v24 = vsel %vm1689_vm5, %v3208_v27, %v1688_v0  ;;  %v1700_v44 = vmul.f32 %v1699_v25, %v3222_v40 }
 0x1f2   : > { %v1767_v58 = vmul.f32 %v3334_v43, %v3296_v48  ;;  %v1722_v18 = vsub.f32 1.5, %v1721_v53  ;;  %v1711_v50 = vmul.f32 %v3276_v52, %v1710_v51  ;;  %v1733_v4 = vmul.f32 0.5, %v1732_v39 }
 0x1f3   : > { %2357 = vrsqrt.f32 %v3303_v46  ;;  %v1756_v19 = vmul.f32 %v3323_v10, %v1755_v34  ;;  %v1863_v6 = vsel %vm1827_vm9, %v1669_v17, 0.0  ;;  %vm1701_vm7 = vcmp.eq.f32.partialorder %v3222_v40, inf }
 0x1f4   : > { %v1704_v22 = vand.u32 2147483648, %v3222_v40  ;;  %v1681_v52 = vsel %vm1679_vm4, %v1680_v30, %v1678_v29  ;;  %v1745_v9 = vmul.f32 0.5, %v1744_v55  ;;  %v1768_v31 = vmul.f32 %v3334_v43, %v1767_v58 }
 0x1f5   : > { %v1702_v36 = vsel %vm1701_vm7, %v3222_v40, %v1700_v44  ;;  %v1723_v2 = vmul.f32 %v3288_v21, %v1722_v18  ;;  %v1693_v45 = vsel %vm1691_vm6, %v1692_v32, %v1690_v24  ;;  %v1712_v57 = vmul.f32 %v1711_v50, %v3242_v15 }
 0x1f6   : > { %v1734_v12 = vsub.f32 1.5, %v1733_v4  ;;  %v1757_v33 = vmul.f32 0.5, %v1756_v19  ;;  %vm1703_vm8 = vcmp.eq.f32.partialorder %v3222_v40, 0.0  ;;  %v1864_v49 = vadd.f32 %v1863_v6, %v1862_v20 }
 0x1f7   : > { %v1865_v7 = vsel %vm1827_vm9, %v1681_v52, 0.0  ;;  %v1705_v47 = vsel %vm1703_vm8, %v1704_v22, %v1702_v36  ;;  %v1746_v5 = vsub.f32 1.5, %v1745_v9  ;;  %vm1713_vm10 = vcmp.eq.f32.partialorder %v3242_v15, inf }
 0x1f8   : > { %v1405_v11 = vpop.xlane.xlu2 %1404  ;;  %v1716_v27 = vand.u32 2147483648, %v3242_v15  ;;  %v1724_v16 = vmul.f32 %v1723_v2, %v3254_v3  ;;  %v1867_v42 = vsel %vm1827_vm9, %v1693_v45, 0.0  ;;  %v1714_v59 = vsel %vm1713_vm10, %v3242_v15, %v1712_v57 }
 0x1f9   : > { %v3327_v62 = vmax.f32 %v1405_v11, 0.0  ;;  %v3343_v37 = vpop.eup %2357  ;;  %v1769_v11 = vmul.f32 0.5, %v1768_v31  ;;  %v1735_v40 = vmul.f32 %v3307_v38, %v1734_v12  ;;  %v1758_v26 = vsub.f32 1.5, %v1757_v33 }
 0x1fa   : > { %v1779_v28 = vmul.f32 %v3343_v37, %v3303_v46  ;;  %vm1715_vm11 = vcmp.eq.f32.partialorder %v3242_v15, 0.0  ;;  %vm1725_vm12 = vcmp.eq.f32.partialorder %v3254_v3, inf  ;;  %v1866_v0 = vadd.f32 %v1865_v7, %v1864_v49 }
 0x1fb   : > { %2359 = vrsqrt.f32 %v3327_v62  ;;  %v1869_v25 = vsel %vm1827_vm9, %v1705_v47, 0.0  ;;  %v1747_v53 = vmul.f32 %v3314_v63, %v1746_v5  ;;  %v1770_v51 = vsub.f32 1.5, %v1769_v11 }
 0x1fc   : > { %v1780_v61 = vmul.f32 %v3343_v37, %v1779_v28  ;;  %v1717_v30 = vsel %vm1715_vm11, %v1716_v27, %v1714_v59  ;;  %v1726_v32 = vsel %vm1725_vm12, %v3254_v3, %v1724_v16  ;;  %v1868_v38 = vadd.f32 %v1867_v42, %v1866_v0 }
 0x1fd   : > { %v1736_v20 = vmul.f32 %v1735_v40, %v3272_v23  ;;  %v1759_v17 = vmul.f32 %v3323_v10, %v1758_v26  ;;  %vm1727_vm13 = vcmp.eq.f32.partialorder %v3254_v3, 0.0  ;;  %v1728_v58 = vand.u32 2147483648, %v3254_v3 }
 0x1fe   : > { %v1781_v60 = vmul.f32 0.5, %v1780_v61  ;;  %v1870_v29 = vadd.f32 %v1869_v25, %v1868_v38  ;;  %v1748_v24 = vmul.f32 %v1747_v53, %v3280_v54  ;;  %v1771_v44 = vmul.f32 %v3334_v43, %v1770_v51 }
 0x1ff   : > { %vm1737_vm14 = vcmp.eq.f32.partialorder %v3272_v23, inf  ;;  %v1871_v10 = vsel %vm1827_vm9, %v1717_v30, 0.0  ;;  %v1760_v28 = vmul.f32 %v1759_v17, %v3286_v35  ;;  %vm1739_vm15 = vcmp.eq.f32.partialorder %v3272_v23, 0.0 }
 0x200   : > { %v1407_v8 = vpop.xlane.xlu1 %1406  ;;  %v1782_v15 = vsub.f32 1.5, %v1781_v60  ;;  %v1738_v19 = vsel %vm1737_vm14, %v3272_v23, %v1736_v20  ;;  %v1740_v43 = vand.u32 2147483648, %v3272_v23  ;;  %vm1749_vm0 = vcmp.eq.f32.partialorder %v3280_v54, inf }
 0x201   : > { %v3363_v1 = vpop.eup %2359  ;;  %v3368_v41 = vmax.f32 %v1407_v8, 0.0  ;;  %v1729_v8 = vsel %vm1727_vm13, %v1728_v58, %v1726_v32  ;;  %v1750_v22 = vsel %vm1749_vm0, %v3280_v54, %v1748_v24  ;;  %v1772_v52 = vmul.f32 %v1771_v44, %v3296_v48 }
 0x202   : > { %v1791_v14 = vmul.f32 %v3363_v1, %v3327_v62  ;;  %v1783_v3 = vmul.f32 %v3343_v37, %v1782_v15  ;;  %v1873_v31 = vsel %vm1827_vm9, %v1729_v8, 0.0  ;;  %v1752_v37 = vand.u32 2147483648, %v3280_v54 }
 0x203   : > { %2361 = vrsqrt.f32 %v3368_v41  ;;  %vm1761_vm1 = vcmp.eq.f32.partialorder %v3286_v35, inf  ;;  %v1872_v36 = vadd.f32 %v1871_v10, %v1870_v29  ;;  %vm1751_vm2 = vcmp.eq.f32.partialorder %v3280_v54, 0.0 }
 0x204   : > { %v1792_v21 = vmul.f32 %v3363_v1, %v1791_v14  ;;  %v1741_v14 = vsel %vm1739_vm15, %v1740_v43, %v1738_v19  ;;  %v1762_v23 = vsel %vm1761_vm1, %v3286_v35, %v1760_v28  ;;  %v1784_v2 = vmul.f32 %v1783_v3, %v3303_v46 }
 0x205   : > { %v1753_v57 = vsel %vm1751_vm2, %v1752_v37, %v1750_v22  ;;  %v1764_v12 = vand.u32 2147483648, %v3286_v35  ;;  %vm1773_vm3 = vcmp.eq.f32.partialorder %v3296_v48, inf  ;;  %vm1763_vm4 = vcmp.eq.f32.partialorder %v3286_v35, 0.0 }
 0x206   : > { %v1793_v39 = vmul.f32 0.5, %v1792_v21  ;;  %v1774_v33 = vsel %vm1773_vm3, %v3296_v48, %v1772_v52  ;;  %v1875_v49 = vsel %vm1827_vm9, %v1741_v14, 0.0  ;;  %vm1775_vm5 = vcmp.eq.f32.partialorder %v3296_v48, 0.0 }
 0x207   : > { %v1765_v7 = vsel %vm1763_vm4, %v1764_v12, %v1762_v23  ;;  %v1776_v47 = vand.u32 2147483648, %v3296_v48  ;;  %vm1785_vm6 = vcmp.eq.f32.partialorder %v3303_v46, inf  ;;  %v1877_v21 = vsel %vm1827_vm9, %v1753_v57, 0.0 }
 0x208   : > { %v1409_v63 = vpop.xlane.xlu0 %1408  ;;  %v1794_v18 = vsub.f32 1.5, %v1793_v39  ;;  %v1786_v5 = vsel %vm1785_vm6, %v3303_v46, %v1784_v2  ;;  %v1788_v16 = vand.u32 2147483648, %v3303_v46  ;;  %vm1797_vm7 = vcmp.eq.f32.partialorder %v3327_v62, inf }
 0x209   : > { %v2362_v13 = vpop.eup %2361  ;;  %v3403_v4 = vmax.f32 %v1409_v63, 0.0  ;;  %v1777_v27 = vsel %vm1775_vm5, %v1776_v47, %v1774_v33  ;;  %vm1787_vm8 = vcmp.eq.f32.partialorder %v3303_v46, 0.0  ;;  %v1879_v40 = vsel %vm1827_vm9, %v1765_v7, 0.0 }
 0x20a   : > { %v1803_v34 = vmul.f32 %v2362_v13, %v3368_v41  ;;  %v1795_v9 = vmul.f32 %v3363_v1, %v1794_v18  ;;  %v1874_v1 = vadd.f32 %v1873_v31, %v1872_v36  ;;  %v1789_v26 = vsel %vm1787_vm8, %v1788_v16, %v1786_v5 }
 0x20b   : > { %2363 = vrsqrt.f32 %v3403_v4  ;;  %v1800_v60 = vand.u32 2147483648, %v3327_v62  ;;  %vm1809_vm10 = vcmp.eq.f32.partialorder %v3368_v41, inf  ;;  %vm1799_vm11 = vcmp.eq.f32.partialorder %v3327_v62, 0.0 }
 0x20c   : > { %v1804_v55 = vmul.f32 %v2362_v13, %v1803_v34  ;;  %v1796_v61 = vmul.f32 %v1795_v9, %v3327_v62  ;;  %v1876_v42 = vadd.f32 %v1875_v49, %v1874_v1  ;;  %v1881_v53 = vsel %vm1827_vm9, %v1777_v27, 0.0 }
 0x20d   : > { %v1812_v46 = vand.u32 2147483648, %v3368_v41  ;;  %vm1811_vm12 = vcmp.eq.f32.partialorder %v3368_v41, 0.0  ;;  %v1883_v30 = vsel %vm1827_vm9, %v1789_v26, 0.0  ;;  %vm1821_vm13 = vcmp.eq.f32.partialorder %v3403_v4, inf }
 0x20e   : > { %v1805_v50 = vmul.f32 0.5, %v1804_v55  ;;  %v1798_v48 = vsel %vm1797_vm7, %v3327_v62, %v1796_v61  ;;  %v1824_v58 = vand.u32 2147483648, %v3403_v4  ;;  %vm1823_vm14 = vcmp.eq.f32.partialorder %v3403_v4, 0.0 }
 0x20f   : > { %v1801_v51 = vsel %vm1799_vm11, %v1800_v60, %v1798_v48  ;;  %vm255_vm15 = vcmask 0   ;;  %v2010_v2 = vlaneseq }
 0x210   : > { %v1806_v6 = vsub.f32 1.5, %v1805_v50  ;;  %v1885_v17 = vsel %vm1827_vm9, %v1801_v51, 0.0  ;;  %256 = vst.msk [vmem:[#allocation4] sm:$0x1] %vm255_vm15, %v2390_v56 }
 0x211   : > { %v2364_v54 = vpop.eup %2363  ;;  %v2013_v57 = vand.u32 127, %v2010_v2 }
 0x212   : > { %v1807_v45 = vmul.f32 %v2362_v13, %v1806_v6  ;;  %v1815_v35 = vmul.f32 %v2364_v54, %v3403_v4  ;;  %v1878_v13 = vadd.f32 %v1877_v21, %v1876_v42 }
 0x213   : > { %vm2017_vm0 = vcmp.eq.s32.totalorder %v2013_v57, 1  ;;  %vm2015_vm1 = vcmp.eq.s32.totalorder %v2013_v57, 0 }
 0x214   : > { %v1808_v11 = vmul.f32 %v1807_v45, %v3368_v41  ;;  %v1816_v59 = vmul.f32 %v2364_v54, %v1815_v35  ;;  %v1880_v39 = vadd.f32 %v1879_v40, %v1878_v13  ;;  %v2011_v45 = vshrl.u32 %v2010_v2, 7 }
 0x216   : > { %v1810_v0 = vsel %vm1809_vm10, %v3368_v41, %v1808_v11  ;;  %v1817_v25 = vmul.f32 0.5, %v1816_v59  ;;  %v1882_v38 = vadd.f32 %v1881_v53, %v1880_v39 }
 0x217   : > { %v1813_v32 = vsel %vm1811_vm12, %v1812_v46, %v1810_v0  ;;  %v1826_v9 = vld [vmem:[#allocation4] sm:$0x1] }
 0x218   : > { %v1818_v34 = vsub.f32 1.5, %v1817_v25  ;;  %v1884_v62 = vadd.f32 %v1883_v30, %v1882_v38  ;;  %v1887_v55 = vsel %vm1827_vm9, %v1813_v32, 0.0 }
 0x21a   : > { %v1819_v20 = vmul.f32 %v2364_v54, %v1818_v34  ;;  %v1886_v29 = vadd.f32 %v1885_v17, %v1884_v62 }
 0x21c   : > { %v1820_v15 = vmul.f32 %v1819_v20, %v3403_v4  ;;  %v1888_v24 = vadd.f32 %v1887_v55, %v1886_v29 }
 0x21e   : > { %v1822_v41 = vsel %vm1821_vm13, %v3403_v4, %v1820_v15 }
 0x21f   : > { %v1825_v63 = vsel %vm1823_vm14, %v1824_v58, %v1822_v41 }
 0x220   : > { %v1889_v44 = vsel %vm1827_vm9, %v1825_v63, 0.0  ;;  %vm2014_vm9 = vcmp.eq.s32.totalorder %v2011_v45, 0 }
 0x221   : > { %v1890_v18 = vadd.f32 %v1889_v44, %v1888_v24  ;;  %vm2018_vm2 = vmand %vm2014_vm9, %vm2017_vm0 }
 0x222   : > { %vm2016_vm3 = vmand %vm2014_vm9, %vm2015_vm1 }
 0x223   : > { %1891 = vadd.xlane.f32.xlu2 %v1890_v18 }
 0x239   : > { %v2002_v43 = vpop.xlane.xlu1 %2001 }
 0x23a   : > { %v2003_v4 = vrot.slane %v2002_v43, 4 }
 0x23c   : > { %v2004_v22 = vadd.f32 %v2003_v4, %v2002_v43 }
 0x23e   : > { %v2005_v52 = vrot.slane %v2004_v22, 2 }
 0x240   : > { %v2006_v37 = vadd.f32 %v2005_v52, %v2004_v22 }
 0x242   : > { %v2007_v56 = vrot.slane %v2006_v37, 1 }
 0x244   : > { %v2008_v23 = vadd.f32 %v2007_v56, %v2006_v37 }
 0x296   : > { %v1892_v50 = vpop.xlane.xlu2 %1891 }
 0x297   : > { %v1893_v8 = vrot.slane %v1892_v50, 4 }
 0x299   : > { %v1894_v10 = vadd.f32 %v1893_v8, %v1892_v50 }
 0x29b   : > { %v1895_v19 = vrot.slane %v1894_v10, 2 }
 0x29d   : > { %v1896_v28 = vadd.f32 %v1895_v19, %v1894_v10 }
 0x29f   : > { %v1897_v3 = vrot.slane %v1896_v28, 1 }
 0x2a1   : > { %v1898_v6 = vadd.f32 %v1897_v3, %v1896_v28 }
 0x2a3   : > { %2258 = vpush %v1898_v6 }
 0x2d4   : > { %s2259_s21 = spop %2258 }
 0x2d5   : > { %v1900_v31 = vstv %s2259_s21 }
 0x2d6   : > { %v1901_v14 = vadd.f32 %v1900_v31, %v1826_v9 }
 0x2d8   : > { %1903 = vst.msk [vmem:[#allocation4] sm:$0x1] %vm255_vm15, %v1901_v14 }
 0x2df   : > { %v1995_v36 = vld [vmem:[#allocation4] sm:$0x1] }
 0x2e0   : > { %2260 = vpush %v1995_v36 }
 0x2e1   : > { %2262 = vpush %v2008_v23 }
 0x311   : > { %s2261_s23 = spop %2260 }
 0x312   : > { %v2021_v12 = vstv %s2261_s23  ;;  %s2263_s24 = spop %2262 }
 0x313   : > { %v2019_v1 = vstv %s2263_s24 }
 0x314   : > { %v2020_v33 = vsel %vm2018_vm2, %v2019_v1, 0.0 }
 0x315   : > { %v2022_v61 = vsel %vm2016_vm3, %v2021_v12, %v2020_v33 }
 0x316   : > { %2023 = vst [vmem:[%s212_s27] sm:$0xff] %v2022_v61 }
 0x317 PF: > { %s12_s11 = sadd.s32 1, %s2387_s11   ;;  %s3476_s9 = smov %s2383_s10 }
 0x318   : > { %p9_p5 = scmp.ge.s32.totalorder %s12_s11, 4   ;;  %s3477_s10 = smov %s3479_s12 }
 0x31a   :  { %11 = sbr.rel (!%p9_p5) target bundleno = 2 (0x2), region = 87 }

</bundles_post_ra>
